<compile_context>
chip_gen: v7x
topology: tpu7x:2x2x1
jax: 0.10.0
libtpu: 0.0.40
codegen_flags: <defaults>
</compile_context>

<pallas_src>
import functools

import jax
import jax.numpy as jnp
from jax.experimental import pallas as pl
from jax.experimental.pallas import tpu as pltpu

NEG = -1e30


def _elu(x):
    # exp only on the non-positive branch (avoids inf in the dead branch).
    return jnp.where(x > 0, x, jnp.exp(jnp.minimum(x, 0.0)) - 1.0)


def _sigmoid(x):
    return 1.0 / (1.0 + jnp.exp(-x))


# ----------------------------------------------------------------------------
# Fused kernel: grid axis = time step t in [0, L]; scratch = history state.
# ----------------------------------------------------------------------------
def _fused_kernel(L, T, testFrom, nbSteps, nbNodes,
                  # inputs (all VMEM-resident, constant index maps)
                  times_ref, inf_ref, emb_ref,
                  We_ref, be_ref, W1_ref, b1_ref, W2_ref, b2_ref,
                  Wgh_ref, Wgd_ref, bg_ref, Wu_ref, bu_ref, Wb_ref, bb_ref,
                  Wl_ref, bl_ref,
                  Wn1_ref, bn1_ref, Wn2_ref, bn2_ref, Wn3_ref, bn3_ref,
                  Wt_ref, bt_ref, w_ref,
                  # outputs (accumulators, constant index maps)
                  loss_out, tloss_out,
                  # persistent VMEM scratch
                  hprev_s, h2prev_s, uprev_s, bprev_s, lam_s, discard_s):
    t = pl.program_id(0)
    S1 = nbSteps + 1
    N1 = nbNodes + 1
    Lh, B, nh = hprev_s.shape

    # ---------------- init (t == 0) ----------------
    @pl.when(t == 0)
    def _init():
        hprev_s[...] = jnp.zeros_like(hprev_s)
        h2prev_s[...] = jnp.zeros_like(h2prev_s)
        uprev_s[...] = jnp.zeros_like(uprev_s)
        bprev_s[...] = jnp.zeros_like(bprev_s)
        lam_s[...] = jnp.zeros_like(lam_s)
        discard_s[...] = jnp.zeros_like(discard_s)
        loss_out[...] = jnp.zeros_like(loss_out)
        tloss_out[...] = jnp.zeros_like(tloss_out)

    # ---------------- loss for step t (uses state written at steps < t) -----
    @pl.when(t > 0)
    def _loss():
        is_final = t == L
        quand = times_ref[jnp.minimum(t, L - 1)]          # (B, 1)
        lastT = times_ref[jnp.maximum(t - 1, 0)]          # (B, 1)
        qui = inf_ref[jnp.minimum(t, L - 1)]              # (B, 1) int32

        gapT = jnp.where(is_final, T - lastT, quand - lastT)
        in_mask = jnp.logical_or(quand >= testFrom, quand < 0.0).astype(jnp.float32)
        mask = jnp.where(is_final, 1.0, in_mask)                      # (B, 1)
        tmask = jnp.where(is_final, 0.0, (quand > 0.0).astype(jnp.float32))
        tgt = jnp.where(is_final, nbNodes, qui)                       # (B, 1)

        # softmax over the valid history prefix (n = t entries)
        valid = jax.lax.broadcasted_iota(jnp.int32, (Lh, B, 1), 0) < t
        bp = jnp.where(valid, bprev_s[...], NEG)
        bm = jnp.max(bp, axis=0, keepdims=True)
        ebp = jnp.exp(bp - bm)
        bsoft = ebp * pl.reciprocal(jnp.sum(ebp, axis=0, keepdims=True), approx=True)
        coef = jnp.where(valid, bsoft * lam_s[...], 0.0)              # (L, B, 1)
        c = jnp.sum(coef * uprev_s[...], axis=0)                      # (B, nh)

        # nextInfected: Linear -> sigmoid -> Linear -> sigmoid -> Linear
        x = _sigmoid(jnp.dot(c, Wn1_ref[...], preferred_element_type=jnp.float32) + bn1_ref[...])
        x = _sigmoid(jnp.dot(x, Wn2_ref[...], preferred_element_type=jnp.float32) + bn2_ref[...])
        logits = jnp.dot(x, Wn3_ref[...], preferred_element_type=jnp.float32) + bn3_ref[...]
        logits = logits + discard_s[...]                              # (B, N1)

        lane = jax.lax.broadcasted_iota(jnp.int32, (B, N1), 1)
        lm = jnp.max(logits, axis=1, keepdims=True)
        lse = lm + jnp.log(jnp.sum(jnp.exp(logits - lm), axis=1, keepdims=True))
        tgt_logit = jnp.sum(jnp.where(lane == tgt, logits, 0.0), axis=1, keepdims=True)
        cr = lse - tgt_logit                                          # per-example CE
        loss_out[...] += jnp.sum(cr * mask, axis=0, keepdims=True)    # (1, 1)

        # nextTime head + time log-likelihood term
        nt = _sigmoid(jnp.dot(c, Wt_ref[...], preferred_element_type=jnp.float32) + bt_ref[...])
        wv = w_ref[...]                                               # (1, 1)
        gp = jnp.log(gapT + 1.0)
        ntt = nt + wv * gp
        nt2 = ntt + jnp.exp(nt) / wv - jnp.exp(ntt) / wv
        tloss_out[...] += -jnp.sum(nt2 * mask * tmask, axis=0, keepdims=True)

    # ---------------- diffusion cell for step t (t < L) ----------------
    @pl.when(t < L)
    def _step():
        qui = inf_ref[jnp.minimum(t, L - 1)]                          # (B, 1)
        lane = jax.lax.broadcasted_iota(jnp.int32, (B, N1), 1)
        # discard the node infected at step t (after this step's loss).
        discard_s[...] = jnp.where(lane == qui, NEG, discard_s[...])

        emb = emb_ref[jnp.minimum(t, L - 1)]                          # (B, nwe)
        h = _elu(jnp.dot(emb, We_ref[...], preferred_element_type=jnp.float32) + be_ref[...])
        h2_new = jnp.dot(h, W2_ref[...], preferred_element_type=jnp.float32) + b2_ref[...]

        # lambdaT: per-time-bin weight lookup over the whole history buffer
        # (invalid rows j >= t are masked at loss time).
        quand = times_ref[jnp.minimum(t, L - 1)]                      # (B, 1)
        diff = quand[None, :, :] - times_ref[...]                     # (L, B, 1)
        bins = jnp.clip(jnp.floor(diff * float(nbSteps) / T),
                        0.0, float(nbSteps)).astype(jnp.int32)
        wl = Wl_ref[...]                                              # (1, S1)
        lam = jnp.zeros((Lh, B, 1), jnp.float32) + bl_ref[...]
        for s in range(S1):                                           # S1 is small, static
            lam = lam + jnp.where(bins == s, wl[:, s:s + 1], 0.0)
        lam_s[...] = lam

        # attention over the history (rows >= t masked; result unused at t==0)
        h1 = jnp.dot(h, W1_ref[...], preferred_element_type=jnp.float32) + b1_ref[...]
        scores = jnp.sum(h1[None, :, :] * h2prev_s[...], axis=2, keepdims=True)  # (L,B,1)
        validL = jax.lax.broadcasted_iota(jnp.int32, (Lh, B, 1), 0) < t
        scores = jnp.where(validL, scores, NEG)
        sm = jnp.max(scores, axis=0, keepdims=True)
        se = jnp.exp(scores - sm)
        a = se * pl.reciprocal(jnp.sum(se, axis=0, keepdims=True), approx=True)
        d = jnp.sum(a * hprev_s[...], axis=0)                         # (B, nh)

        g = _sigmoid(jnp.dot(h, Wgh_ref[...], preferred_element_type=jnp.float32)
                     + jnp.dot(d, Wgd_ref[...], preferred_element_type=jnp.float32)
                     + bg_ref[...])                                   # (B, 1)
        u = jnp.where(t > 0, g * h + (1.0 - g) * d, h)

        uo = _elu(jnp.dot(u, Wu_ref[...], preferred_element_type=jnp.float32) + bu_ref[...])
        bscore = jnp.dot(uo, Wb_ref[...], preferred_element_type=jnp.float32) + bb_ref[...]

        # in-VMEM history updates (dynamic leading-axis stores)
        hprev_s[t] = h
        h2prev_s[t] = h2_new
        uprev_s[t] = u
        bprev_s[t] = bscore


def _const_spec(shape):
    nz = (0,) * len(shape)
    return pl.BlockSpec(shape, lambda t, _z=nz: _z)


# ----------------------------------------------------------------------------
# Forward wrapper (mirrors DANdiffusionModel.forward, no-padding case)
# ----------------------------------------------------------------------------
def dan_forward(infected, times, params, *, T, nbSteps, nh, nbNodes, testFrom=0.0):
    B, L = infected.shape
    N1 = nbNodes + 1

    times3 = jnp.transpose(times).astype(jnp.float32)[:, :, None]     # (L, B, 1)
    inf3 = jnp.transpose(infected).astype(jnp.int32)[:, :, None]      # (L, B, 1)
    emb3 = params['emb'][jnp.transpose(infected)]                     # (L, B, nwe)

    weight_names = ('We', 'be', 'W1', 'b1', 'W2', 'b2', 'Wgh', 'Wgd', 'bg',
                    'Wu', 'bu', 'Wb', 'bb', 'Wl', 'bl',
                    'Wn1', 'bn1', 'Wn2', 'bn2', 'Wn3', 'bn3', 'Wt', 'bt', 'w')
    ins = [times3, inf3, emb3] + [params[k] for k in weight_names]

    out_shape = (jax.ShapeDtypeStruct((1, 1), jnp.float32),
                 jax.ShapeDtypeStruct((1, 1), jnp.float32))
    out_specs = (pl.BlockSpec((1, 1), lambda t: (0, 0)),
                 pl.BlockSpec((1, 1), lambda t: (0, 0)))

    scratch = [
        pltpu.VMEM((L, B, nh), jnp.float32),   # hprev
        pltpu.VMEM((L, B, nh), jnp.float32),   # h2(hprev)
        pltpu.VMEM((L, B, nh), jnp.float32),   # uprev
        pltpu.VMEM((L, B, 1), jnp.float32),    # bprev scores
        pltpu.VMEM((L, B, 1), jnp.float32),    # lambdaT
        pltpu.VMEM((B, N1), jnp.float32),      # discard
    ]

    grid_spec = pltpu.PrefetchScalarGridSpec(
        num_scalar_prefetch=0,
        grid=(L + 1,),
        in_specs=[_const_spec(a.shape) for a in ins],
        out_specs=out_specs,
        scratch_shapes=scratch,
    )

    kernel = functools.partial(_fused_kernel, L, float(T), float(testFrom),
                               int(nbSteps), int(nbNodes))
    loss2, tloss2 = pl.pallas_call(
        kernel,
        out_shape=out_shape,
        grid_spec=grid_spec,
        compiler_params=pltpu.CompilerParams(dimension_semantics=("arbitrary",)),
    )(*ins)

    goodLinks, nbLinks = 0, 0   # fromWho is None
    return loss2[0, 0], tloss2[0, 0], goodLinks, nbLinks


# ----------------------------------------------------------------------------
# Deterministic parameter init (shapes from DANdiffusionModel.__init__)
# ----------------------------------------------------------------------------
def make_params(key, *, nbNodes, nh, nwe, nbSteps):
    S1 = nbSteps + 1
    ks = iter(jax.random.split(key, 24))

    def uni(shape, scale):
        return jax.random.uniform(next(ks), shape, jnp.float32, -scale, scale)

    return {
        'emb': uni((nbNodes, nwe), 0.1),                                        # node_embedding
        'We': uni((nwe, nh), nwe ** -0.5), 'be': uni((1, nh), nwe ** -0.5),     # encoder
        'W1': uni((nh, nh), nh ** -0.5), 'b1': uni((1, nh), nh ** -0.5),        # h1
        'W2': uni((nh, nh), nh ** -0.5), 'b2': uni((1, nh), nh ** -0.5),        # h2
        'Wgh': uni((nh, 1), (2 * nh) ** -0.5),                                   # g (split cat)
        'Wgd': uni((nh, 1), (2 * nh) ** -0.5),
        'bg': uni((1, 1), (2 * nh) ** -0.5),
        'Wu': uni((nh, nh), nh ** -0.5), 'bu': uni((1, nh), nh ** -0.5),         # u
        'Wb': uni((nh, 1), nh ** -0.5), 'bb': uni((1, 1), nh ** -0.5),           # b
        'Wl': uni((1, S1), S1 ** -0.5), 'bl': uni((1, 1), S1 ** -0.5),           # lambdaT
        'Wn1': uni((nh, nh), 0.1), 'bn1': jnp.zeros((1, nh), jnp.float32),       # nextInfected
        'Wn2': uni((nh, nh), 0.1), 'bn2': jnp.zeros((1, nh), jnp.float32),
        'Wn3': uni((nh, nbNodes + 1), 0.1),
        'bn3': jnp.zeros((1, nbNodes + 1), jnp.float32),
        'Wt': uni((nh, 1), 0.1), 'bt': jnp.zeros((1, 1), jnp.float32),           # nextTime
        'w': jnp.full((1, 1), 0.8, jnp.float32),                                 # w embedding
    }


if __name__ == "__main__":
    B, L = 4, 6
    nbNodes = 12
    nh, nwe = 32, 16
    T = 120.0          # constructor bumps T to >= 100
    nbSteps = 10

    root = jax.random.PRNGKey(0)
    k_params, k_inf, k_times = jax.random.split(root, 3)

    params = make_params(k_params, nbNodes=nbNodes, nh=nh, nwe=nwe, nbSteps=nbSteps)

    # infected: distinct node ids per cascade; times: strictly positive, sorted
    rows = [jax.random.permutation(jax.random.fold_in(k_inf, b), nbNodes)[:L]
            for b in range(B)]
    infected = jnp.stack(rows).astype(jnp.int32)
    times = jnp.sort(jax.random.uniform(k_times, (B, L), jnp.float32, 1.0, T - 1.0), axis=1)

    loss, tloss, goodLinks, nbLinks = dan_forward(
        infected, times, params, T=T, nbSteps=nbSteps, nh=nh, nbNodes=nbNodes, testFrom=0.0)
    jax.block_until_ready((loss, tloss))
    print("KERNEL_OK")
</pallas_src>

<mosaic_0001>
module attributes {stable_mosaic.version = 11 : i64} {
  func.func @_fused_kernel(%arg0: i32, %arg1: memref<6x4x1xf32, #tpu.memory_space<vmem>>, %arg2: memref<6x4x1xi32, #tpu.memory_space<vmem>>, %arg3: memref<6x4x16xf32, #tpu.memory_space<vmem>>, %arg4: memref<16x32xf32, #tpu.memory_space<vmem>>, %arg5: memref<1x32xf32, #tpu.memory_space<vmem>>, %arg6: memref<32x32xf32, #tpu.memory_space<vmem>>, %arg7: memref<1x32xf32, #tpu.memory_space<vmem>>, %arg8: memref<32x32xf32, #tpu.memory_space<vmem>>, %arg9: memref<1x32xf32, #tpu.memory_space<vmem>>, %arg10: memref<32x1xf32, #tpu.memory_space<vmem>>, %arg11: memref<32x1xf32, #tpu.memory_space<vmem>>, %arg12: memref<1x1xf32, #tpu.memory_space<vmem>>, %arg13: memref<32x32xf32, #tpu.memory_space<vmem>>, %arg14: memref<1x32xf32, #tpu.memory_space<vmem>>, %arg15: memref<32x1xf32, #tpu.memory_space<vmem>>, %arg16: memref<1x1xf32, #tpu.memory_space<vmem>>, %arg17: memref<1x11xf32, #tpu.memory_space<vmem>>, %arg18: memref<1x1xf32, #tpu.memory_space<vmem>>, %arg19: memref<32x32xf32, #tpu.memory_space<vmem>>, %arg20: memref<1x32xf32, #tpu.memory_space<vmem>>, %arg21: memref<32x32xf32, #tpu.memory_space<vmem>>, %arg22: memref<1x32xf32, #tpu.memory_space<vmem>>, %arg23: memref<32x13xf32, #tpu.memory_space<vmem>>, %arg24: memref<1x13xf32, #tpu.memory_space<vmem>>, %arg25: memref<32x1xf32, #tpu.memory_space<vmem>>, %arg26: memref<1x1xf32, #tpu.memory_space<vmem>>, %arg27: memref<1x1xf32, #tpu.memory_space<vmem>>, %arg28: memref<1x1xf32, #tpu.memory_space<vmem>>, %arg29: memref<1x1xf32, #tpu.memory_space<vmem>>, %arg30: memref<6x4x32xf32, #tpu.memory_space<vmem>>, %arg31: memref<6x4x32xf32, #tpu.memory_space<vmem>>, %arg32: memref<6x4x32xf32, #tpu.memory_space<vmem>>, %arg33: memref<6x4x1xf32, #tpu.memory_space<vmem>>, %arg34: memref<6x4x1xf32, #tpu.memory_space<vmem>>, %arg35: memref<4x13xf32, #tpu.memory_space<vmem>>) attributes {dimension_semantics = [#tpu.dimension_semantics<arbitrary>], iteration_bounds = array<i64: 7>, scalar_prefetch = 0 : i64, scratch_operands = 6 : i64, tpu.core_type = #tpu.core_type<tc>, window_params = [{pipeline_mode = #tpu.pipeline_mode<synchronous>, transform_indices = @transform_0, window_bounds = array<i64: 6, 4, 1>}, {pipeline_mode = #tpu.pipeline_mode<synchronous>, transform_indices = @transform_1, window_bounds = array<i64: 6, 4, 1>}, {pipeline_mode = #tpu.pipeline_mode<synchronous>, transform_indices = @transform_2, window_bounds = array<i64: 6, 4, 16>}, {pipeline_mode = #tpu.pipeline_mode<synchronous>, transform_indices = @transform_3, window_bounds = array<i64: 16, 32>}, {pipeline_mode = #tpu.pipeline_mode<synchronous>, transform_indices = @transform_4, window_bounds = array<i64: 1, 32>}, {pipeline_mode = #tpu.pipeline_mode<synchronous>, transform_indices = @transform_5, window_bounds = array<i64: 32, 32>}, {pipeline_mode = #tpu.pipeline_mode<synchronous>, transform_indices = @transform_6, window_bounds = array<i64: 1, 32>}, {pipeline_mode = #tpu.pipeline_mode<synchronous>, transform_indices = @transform_7, window_bounds = array<i64: 32, 32>}, {pipeline_mode = #tpu.pipeline_mode<synchronous>, transform_indices = @transform_8, window_bounds = array<i64: 1, 32>}, {pipeline_mode = #tpu.pipeline_mode<synchronous>, transform_indices = @transform_9, window_bounds = array<i64: 32, 1>}, {pipeline_mode = #tpu.pipeline_mode<synchronous>, transform_indices = @transform_10, window_bounds = array<i64: 32, 1>}, {pipeline_mode = #tpu.pipeline_mode<synchronous>, transform_indices = @transform_11, window_bounds = array<i64: 1, 1>}, {pipeline_mode = #tpu.pipeline_mode<synchronous>, transform_indices = @transform_12, window_bounds = array<i64: 32, 32>}, {pipeline_mode = #tpu.pipeline_mode<synchronous>, transform_indices = @transform_13, window_bounds = array<i64: 1, 32>}, {pipeline_mode = #tpu.pipeline_mode<synchronous>, transform_indices = @transform_14, window_bounds = array<i64: 32, 1>}, {pipeline_mode = #tpu.pipeline_mode<synchronous>, transform_indices = @transform_15, window_bounds = array<i64: 1, 1>}, {pipeline_mode = #tpu.pipeline_mode<synchronous>, transform_indices = @transform_16, window_bounds = array<i64: 1, 11>}, {pipeline_mode = #tpu.pipeline_mode<synchronous>, transform_indices = @transform_17, window_bounds = array<i64: 1, 1>}, {pipeline_mode = #tpu.pipeline_mode<synchronous>, transform_indices = @transform_18, window_bounds = array<i64: 32, 32>}, {pipeline_mode = #tpu.pipeline_mode<synchronous>, transform_indices = @transform_19, window_bounds = array<i64: 1, 32>}, {pipeline_mode = #tpu.pipeline_mode<synchronous>, transform_indices = @transform_20, window_bounds = array<i64: 32, 32>}, {pipeline_mode = #tpu.pipeline_mode<synchronous>, transform_indices = @transform_21, window_bounds = array<i64: 1, 32>}, {pipeline_mode = #tpu.pipeline_mode<synchronous>, transform_indices = @transform_22, window_bounds = array<i64: 32, 13>}, {pipeline_mode = #tpu.pipeline_mode<synchronous>, transform_indices = @transform_23, window_bounds = array<i64: 1, 13>}, {pipeline_mode = #tpu.pipeline_mode<synchronous>, transform_indices = @transform_24, window_bounds = array<i64: 32, 1>}, {pipeline_mode = #tpu.pipeline_mode<synchronous>, transform_indices = @transform_25, window_bounds = array<i64: 1, 1>}, {pipeline_mode = #tpu.pipeline_mode<synchronous>, transform_indices = @transform_26, window_bounds = array<i64: 1, 1>}, {pipeline_mode = #tpu.pipeline_mode<synchronous>, transform_indices = @transform_27, window_bounds = array<i64: 1, 1>}, {pipeline_mode = #tpu.pipeline_mode<synchronous>, transform_indices = @transform_28, window_bounds = array<i64: 1, 1>}]} {
    %c0_i32 = arith.constant 0 : i32
    %0 = arith.cmpi eq, %arg0, %c0_i32 : i32
    %1 = arith.extui %0 : i1 to i32
    %c0_i32_0 = arith.constant 0 : i32
    %2 = arith.cmpi ne, %1, %c0_i32_0 : i32
    scf.if %2 {
      %cst = arith.constant 0.000000e+00 : f32
      %9 = vector.broadcast %cst : f32 to vector<6x4x32xf32>
      %c0 = arith.constant 0 : index
      %c0_4 = arith.constant 0 : index
      %c0_5 = arith.constant 0 : index
      %10 = vector.load %arg30[%c0, %c0_4, %c0_5] : memref<6x4x32xf32, #tpu.memory_space<vmem>>, vector<6x4x32xf32>
      tpu.vector_store %arg30[%c0, %c0_4, %c0_5], %9 {strides = array<i32>} : memref<6x4x32xf32, #tpu.memory_space<vmem>>, vector<6x4x32xf32>,
      %cst_6 = arith.constant 0.000000e+00 : f32
      %11 = vector.broadcast %cst_6 : f32 to vector<6x4x32xf32>
      %c0_7 = arith.constant 0 : index
      %c0_8 = arith.constant 0 : index
      %c0_9 = arith.constant 0 : index
      %12 = vector.load %arg31[%c0_7, %c0_8, %c0_9] : memref<6x4x32xf32, #tpu.memory_space<vmem>>, vector<6x4x32xf32>
      tpu.vector_store %arg31[%c0_7, %c0_8, %c0_9], %11 {strides = array<i32>} : memref<6x4x32xf32, #tpu.memory_space<vmem>>, vector<6x4x32xf32>,
      %cst_10 = arith.constant 0.000000e+00 : f32
      %13 = vector.broadcast %cst_10 : f32 to vector<6x4x32xf32>
      %c0_11 = arith.constant 0 : index
      %c0_12 = arith.constant 0 : index
      %c0_13 = arith.constant 0 : index
      %14 = vector.load %arg32[%c0_11, %c0_12, %c0_13] : memref<6x4x32xf32, #tpu.memory_space<vmem>>, vector<6x4x32xf32>
      tpu.vector_store %arg32[%c0_11, %c0_12, %c0_13], %13 {strides = array<i32>} : memref<6x4x32xf32, #tpu.memory_space<vmem>>, vector<6x4x32xf32>,
      %cst_14 = arith.constant 0.000000e+00 : f32
      %15 = vector.broadcast %cst_14 : f32 to vector<6x4x1xf32>
      %c0_15 = arith.constant 0 : index
      %c0_16 = arith.constant 0 : index
      %c0_17 = arith.constant 0 : index
      %16 = vector.load %arg33[%c0_15, %c0_16, %c0_17] : memref<6x4x1xf32, #tpu.memory_space<vmem>>, vector<6x4x1xf32>
      tpu.vector_store %arg33[%c0_15, %c0_16, %c0_17], %15 {strides = array<i32>} : memref<6x4x1xf32, #tpu.memory_space<vmem>>, vector<6x4x1xf32>,
      %cst_18 = arith.constant 0.000000e+00 : f32
      %17 = vector.broadcast %cst_18 : f32 to vector<6x4x1xf32>
      %c0_19 = arith.constant 0 : index
      %c0_20 = arith.constant 0 : index
      %c0_21 = arith.constant 0 : index
      %18 = vector.load %arg34[%c0_19, %c0_20, %c0_21] : memref<6x4x1xf32, #tpu.memory_space<vmem>>, vector<6x4x1xf32>
      tpu.vector_store %arg34[%c0_19, %c0_20, %c0_21], %17 {strides = array<i32>} : memref<6x4x1xf32, #tpu.memory_space<vmem>>, vector<6x4x1xf32>,
      %cst_22 = arith.constant 0.000000e+00 : f32
      %19 = vector.broadcast %cst_22 : f32 to vector<4x13xf32>
      %c0_23 = arith.constant 0 : index
      %c0_24 = arith.constant 0 : index
      %20 = vector.load %arg35[%c0_23, %c0_24] : memref<4x13xf32, #tpu.memory_space<vmem>>, vector<4x13xf32>
      tpu.vector_store %arg35[%c0_23, %c0_24], %19 {strides = array<i32>} : memref<4x13xf32, #tpu.memory_space<vmem>>, vector<4x13xf32>,
      %cst_25 = arith.constant 0.000000e+00 : f32
      %21 = vector.broadcast %cst_25 : f32 to vector<1x1xf32>
      %c0_26 = arith.constant 0 : index
      %c0_27 = arith.constant 0 : index
      %22 = vector.load %arg28[%c0_26, %c0_27] : memref<1x1xf32, #tpu.memory_space<vmem>>, vector<1x1xf32>
      tpu.vector_store %arg28[%c0_26, %c0_27], %21 {strides = array<i32>} : memref<1x1xf32, #tpu.memory_space<vmem>>, vector<1x1xf32>,
      %cst_28 = arith.constant 0.000000e+00 : f32
      %23 = vector.broadcast %cst_28 : f32 to vector<1x1xf32>
      %c0_29 = arith.constant 0 : index
      %c0_30 = arith.constant 0 : index
      %24 = vector.load %arg29[%c0_29, %c0_30] : memref<1x1xf32, #tpu.memory_space<vmem>>, vector<1x1xf32>
      tpu.vector_store %arg29[%c0_29, %c0_30], %23 {strides = array<i32>} : memref<1x1xf32, #tpu.memory_space<vmem>>, vector<1x1xf32>,
    } else {
    }
    %c0_i32_1 = arith.constant 0 : i32
    %3 = arith.cmpi sgt, %arg0, %c0_i32_1 : i32
    %4 = arith.extui %3 : i1 to i32
    %c0_i32_2 = arith.constant 0 : i32
    %5 = arith.cmpi ne, %4, %c0_i32_2 : i32
    scf.if %5 {
      %c6_i32_4 = arith.constant 6 : i32
      %9 = arith.cmpi eq, %arg0, %c6_i32_4 : i32
      %c5_i32 = arith.constant 5 : i32
      %10 = arith.minsi %arg0, %c5_i32 : i32
      %11 = arith.index_cast %10 : i32 to index
      %c0 = arith.constant 0 : index
      %c0_5 = arith.constant 0 : index
      %12 = vector.load %arg1[%11, %c0, %c0_5] : memref<6x4x1xf32, #tpu.memory_space<vmem>>, vector<1x4x1xf32>
      %13 = vector.shape_cast %12 : vector<1x4x1xf32> to vector<4x1xf32>
      %c1_i32 = arith.constant 1 : i32
      %14 = arith.subi %arg0, %c1_i32 : i32
      %c0_i32_6 = arith.constant 0 : i32
      %15 = arith.maxsi %14, %c0_i32_6 : i32
      %16 = arith.index_cast %15 : i32 to index
      %c0_7 = arith.constant 0 : index
      %c0_8 = arith.constant 0 : index
      %17 = vector.load %arg1[%16, %c0_7, %c0_8] : memref<6x4x1xf32, #tpu.memory_space<vmem>>, vector<1x4x1xf32>
      %18 = vector.shape_cast %17 : vector<1x4x1xf32> to vector<4x1xf32>
      %c5_i32_9 = arith.constant 5 : i32
      %19 = arith.minsi %arg0, %c5_i32_9 : i32
      %20 = arith.index_cast %19 : i32 to index
      %c0_10 = arith.constant 0 : index
      %c0_11 = arith.constant 0 : index
      %21 = vector.load %arg2[%20, %c0_10, %c0_11] : memref<6x4x1xi32, #tpu.memory_space<vmem>>, vector<1x4x1xi32>
      %22 = vector.shape_cast %21 : vector<1x4x1xi32> to vector<4x1xi32>
      %cst = arith.constant 1.200000e+02 : f32
      %23 = vector.broadcast %cst : f32 to vector<4x1xf32>
      %24 = arith.subf %23, %18 : vector<4x1xf32>
      %25 = arith.subf %13, %18 : vector<4x1xf32>
      %26 = arith.select %9, %24, %25 : vector<4x1xf32>
      %cst_12 = arith.constant 0.000000e+00 : f32
      %27 = vector.broadcast %cst_12 : f32 to vector<4x1xf32>
      %28 = arith.cmpf oge, %13, %27 : vector<4x1xf32>
      %cst_13 = arith.constant 0.000000e+00 : f32
      %29 = vector.broadcast %cst_13 : f32 to vector<4x1xf32>
      %30 = arith.cmpf olt, %13, %29 : vector<4x1xf32>
      %31 = arith.ori %28, %30 : vector<4x1xi1>
      %32 = arith.extui %31 : vector<4x1xi1> to vector<4x1xi32>
      %33 = arith.sitofp %32 : vector<4x1xi32> to vector<4x1xf32>
      %cst_14 = arith.constant 1.000000e+00 : f32
      %34 = vector.broadcast %cst_14 : f32 to vector<4x1xf32>
      %35 = arith.select %9, %34, %33 : vector<4x1xf32>
      %cst_15 = arith.constant 0.000000e+00 : f32
      %36 = vector.broadcast %cst_15 : f32 to vector<4x1xf32>
      %37 = arith.cmpf ogt, %13, %36 : vector<4x1xf32>
      %38 = arith.extui %37 : vector<4x1xi1> to vector<4x1xi32>
      %39 = arith.sitofp %38 : vector<4x1xi32> to vector<4x1xf32>
      %cst_16 = arith.constant 0.000000e+00 : f32
      %40 = vector.broadcast %cst_16 : f32 to vector<4x1xf32>
      %41 = arith.select %9, %40, %39 : vector<4x1xf32>
      %c12_i32 = arith.constant 12 : i32
      %42 = vector.broadcast %c12_i32 : i32 to vector<4x1xi32>
      %43 = arith.select %9, %42, %22 : vector<4x1xi32>
      %44 = tpu.iota {dimensions = array<i32: 0>} : vector<6x4x1xi32>
      %45 = vector.broadcast %arg0 : i32 to vector<6x4x1xi32>
      %46 = arith.cmpi slt, %44, %45 : vector<6x4x1xi32>
      %c0_17 = arith.constant 0 : index
      %c0_18 = arith.constant 0 : index
      %c0_19 = arith.constant 0 : index
      %47 = vector.load %arg33[%c0_17, %c0_18, %c0_19] : memref<6x4x1xf32, #tpu.memory_space<vmem>>, vector<6x4x1xf32>
      %cst_20 = arith.constant -1.000000e+30 : f32
      %48 = vector.broadcast %cst_20 : f32 to vector<6x4x1xf32>
      %49 = arith.select %46, %47, %48 : vector<6x4x1xi1>, vector<6x4x1xf32>
      %cst_21 = arith.constant dense<0xFF800000> : vector<4x1xf32>
      %50 = vector.multi_reduction <maximumf>, %49, %cst_21 [0] : vector<6x4x1xf32> to vector<4x1xf32>
      %51 = vector.shape_cast %50 : vector<4x1xf32> to vector<1x4x1xf32>
      %52 = vector.broadcast %51 : vector<1x4x1xf32> to vector<6x4x1xf32>
      %53 = arith.subf %49, %52 : vector<6x4x1xf32>
      %54 = math.exp %53 : vector<6x4x1xf32>
      %cst_22 = arith.constant dense<0.000000e+00> : vector<4x1xf32>
      %55 = vector.multi_reduction <add>, %54, %cst_22 [0] : vector<6x4x1xf32> to vector<4x1xf32>
      %56 = vector.shape_cast %55 : vector<4x1xf32> to vector<1x4x1xf32>
      %57 = tpu.reciprocal %56 {approx = true} : vector<1x4x1xf32> -> vector<1x4x1xf32>
      %58 = vector.broadcast %57 : vector<1x4x1xf32> to vector<6x4x1xf32>
      %59 = arith.mulf %54, %58 : vector<6x4x1xf32>
      %c0_23 = arith.constant 0 : index
      %c0_24 = arith.constant 0 : index
      %c0_25 = arith.constant 0 : index
      %60 = vector.load %arg34[%c0_23, %c0_24, %c0_25] : memref<6x4x1xf32, #tpu.memory_space<vmem>>, vector<6x4x1xf32>
      %61 = arith.mulf %59, %60 : vector<6x4x1xf32>
      %cst_26 = arith.constant 0.000000e+00 : f32
      %62 = vector.broadcast %cst_26 : f32 to vector<6x4x1xf32>
      %63 = arith.select %46, %61, %62 : vector<6x4x1xi1>, vector<6x4x1xf32>
      %c0_27 = arith.constant 0 : index
      %c0_28 = arith.constant 0 : index
      %c0_29 = arith.constant 0 : index
      %64 = vector.load %arg32[%c0_27, %c0_28, %c0_29] : memref<6x4x32xf32, #tpu.memory_space<vmem>>, vector<6x4x32xf32>
      %65 = vector.broadcast %63 : vector<6x4x1xf32> to vector<6x4x32xf32>
      %66 = arith.mulf %65, %64 : vector<6x4x32xf32>
      %cst_30 = arith.constant dense<0.000000e+00> : vector<4x32xf32>
      %67 = vector.multi_reduction <add>, %66, %cst_30 [0] : vector<6x4x32xf32> to vector<4x32xf32>
      %c0_31 = arith.constant 0 : index
      %c0_32 = arith.constant 0 : index
      %68 = vector.load %arg19[%c0_31, %c0_32] : memref<32x32xf32, #tpu.memory_space<vmem>>, vector<32x32xf32>
      %cst_33 = arith.constant dense<0.000000e+00> : vector<4x32xf32>
      %69 = tpu.matmul %67, %68, %cst_33 {dimension_numbers = #tpu.dot_dimension_numbers<[1], [0], [0], [1], [0, 0, 1, 1], [], []>} : vector<4x32xf32>, vector<32x32xf32>, vector<4x32xf32> -> vector<4x32xf32>
      %c0_34 = arith.constant 0 : index
      %c0_35 = arith.constant 0 : index
      %70 = vector.load %arg20[%c0_34, %c0_35] : memref<1x32xf32, #tpu.memory_space<vmem>>, vector<1x32xf32>
      %71 = vector.broadcast %70 : vector<1x32xf32> to vector<4x32xf32>
      %72 = arith.addf %69, %71 : vector<4x32xf32>
      %cst_36 = arith.constant 0.000000e+00 : f32
      %73 = vector.broadcast %cst_36 : f32 to vector<4x32xf32>
      %74 = arith.subf %73, %72 : vector<4x32xf32>
      %75 = math.exp %74 : vector<4x32xf32>
      %cst_37 = arith.constant 1.000000e+00 : f32
      %76 = vector.broadcast %cst_37 : f32 to vector<4x32xf32>
      %77 = arith.addf %76, %75 : vector<4x32xf32>
      %cst_38 = arith.constant 1.000000e+00 : f32
      %78 = vector.broadcast %cst_38 : f32 to vector<4x32xf32>
      %79 = arith.divf %78, %77 : vector<4x32xf32>
      %c0_39 = arith.constant 0 : index
      %c0_40 = arith.constant 0 : index
      %80 = vector.load %arg21[%c0_39, %c0_40] : memref<32x32xf32, #tpu.memory_space<vmem>>, vector<32x32xf32>
      %cst_41 = arith.constant dense<0.000000e+00> : vector<4x32xf32>
      %81 = tpu.matmul %79, %80, %cst_41 {dimension_numbers = #tpu.dot_dimension_numbers<[1], [0], [0], [1], [0, 0, 1, 1], [], []>} : vector<4x32xf32>, vector<32x32xf32>, vector<4x32xf32> -> vector<4x32xf32>
      %c0_42 = arith.constant 0 : index
      %c0_43 = arith.constant 0 : index
      %82 = vector.load %arg22[%c0_42, %c0_43] : memref<1x32xf32, #tpu.memory_space<vmem>>, vector<1x32xf32>
      %83 = vector.broadcast %82 : vector<1x32xf32> to vector<4x32xf32>
      %84 = arith.addf %81, %83 : vector<4x32xf32>
      %cst_44 = arith.constant 0.000000e+00 : f32
      %85 = vector.broadcast %cst_44 : f32 to vector<4x32xf32>
      %86 = arith.subf %85, %84 : vector<4x32xf32>
      %87 = math.exp %86 : vector<4x32xf32>
      %cst_45 = arith.constant 1.000000e+00 : f32
      %88 = vector.broadcast %cst_45 : f32 to vector<4x32xf32>
      %89 = arith.addf %88, %87 : vector<4x32xf32>
      %cst_46 = arith.constant 1.000000e+00 : f32
      %90 = vector.broadcast %cst_46 : f32 to vector<4x32xf32>
      %91 = arith.divf %90, %89 : vector<4x32xf32>
      %c0_47 = arith.constant 0 : index
      %c0_48 = arith.constant 0 : index
      %92 = vector.load %arg23[%c0_47, %c0_48] : memref<32x13xf32, #tpu.memory_space<vmem>>, vector<32x13xf32>
      %cst_49 = arith.constant dense<0.000000e+00> : vector<4x13xf32>
      %93 = tpu.matmul %91, %92, %cst_49 {dimension_numbers = #tpu.dot_dimension_numbers<[1], [0], [0], [1], [0, 0, 1, 1], [], []>} : vector<4x32xf32>, vector<32x13xf32>, vector<4x13xf32> -> vector<4x13xf32>
      %c0_50 = arith.constant 0 : index
      %c0_51 = arith.constant 0 : index
      %94 = vector.load %arg24[%c0_50, %c0_51] : memref<1x13xf32, #tpu.memory_space<vmem>>, vector<1x13xf32>
      %95 = vector.broadcast %94 : vector<1x13xf32> to vector<4x13xf32>
      %96 = arith.addf %93, %95 : vector<4x13xf32>
      %c0_52 = arith.constant 0 : index
      %c0_53 = arith.constant 0 : index
      %97 = vector.load %arg35[%c0_52, %c0_53] : memref<4x13xf32, #tpu.memory_space<vmem>>, vector<4x13xf32>
      %98 = arith.addf %96, %97 : vector<4x13xf32>
      %99 = tpu.iota {dimensions = array<i32: 1>} : vector<4x13xi32>
      %cst_54 = arith.constant dense<0xFF800000> : vector<4xf32>
      %100 = vector.multi_reduction <maximumf>, %98, %cst_54 [1] : vector<4x13xf32> to vector<4xf32>
      %101 = vector.shape_cast %100 : vector<4xf32> to vector<4x1xf32>
      %102 = vector.broadcast %101 : vector<4x1xf32> to vector<4x13xf32>
      %103 = arith.subf %98, %102 : vector<4x13xf32>
      %104 = math.exp %103 : vector<4x13xf32>
      %cst_55 = arith.constant dense<0.000000e+00> : vector<4xf32>
      %105 = vector.multi_reduction <add>, %104, %cst_55 [1] : vector<4x13xf32> to vector<4xf32>
      %106 = vector.shape_cast %105 : vector<4xf32> to vector<4x1xf32>
      %107 = math.log %106 : vector<4x1xf32>
      %108 = arith.addf %101, %107 : vector<4x1xf32>
      %109 = vector.broadcast %43 : vector<4x1xi32> to vector<4x13xi32>
      %110 = arith.cmpi eq, %99, %109 : vector<4x13xi32>
      %cst_56 = arith.constant 0.000000e+00 : f32
      %111 = vector.broadcast %cst_56 : f32 to vector<4x13xf32>
      %112 = arith.select %110, %98, %111 : vector<4x13xi1>, vector<4x13xf32>
      %cst_57 = arith.constant dense<0.000000e+00> : vector<4xf32>
      %113 = vector.multi_reduction <add>, %112, %cst_57 [1] : vector<4x13xf32> to vector<4xf32>
      %114 = vector.shape_cast %113 : vector<4xf32> to vector<4x1xf32>
      %115 = arith.subf %108, %114 : vector<4x1xf32>
      %c0_58 = arith.constant 0 : index
      %c0_59 = arith.constant 0 : index
      %116 = vector.load %arg28[%c0_58, %c0_59] : memref<1x1xf32, #tpu.memory_space<vmem>>, vector<1x1xf32>
      %117 = arith.mulf %115, %35 : vector<4x1xf32>
      %cst_60 = arith.constant dense<0.000000e+00> : vector<1xf32>
      %118 = vector.multi_reduction <add>, %117, %cst_60 [0] : vector<4x1xf32> to vector<1xf32>
      %119 = vector.shape_cast %118 : vector<1xf32> to vector<1x1xf32>
      %120 = arith.addf %116, %119 : vector<1x1xf32>
      %c0_61 = arith.constant 0 : index
      %c0_62 = arith.constant 0 : index
      %121 = vector.load %arg28[%c0_61, %c0_62] : memref<1x1xf32, #tpu.memory_space<vmem>>, vector<1x1xf32>
      tpu.vector_store %arg28[%c0_61, %c0_62], %120 {strides = array<i32>} : memref<1x1xf32, #tpu.memory_space<vmem>>, vector<1x1xf32>,
      %c0_63 = arith.constant 0 : index
      %c0_64 = arith.constant 0 : index
      %122 = vector.load %arg25[%c0_63, %c0_64] : memref<32x1xf32, #tpu.memory_space<vmem>>, vector<32x1xf32>
      %cst_65 = arith.constant dense<0.000000e+00> : vector<4x1xf32>
      %123 = tpu.matmul %67, %122, %cst_65 {dimension_numbers = #tpu.dot_dimension_numbers<[1], [0], [0], [1], [0, 0, 1, 1], [], []>} : vector<4x32xf32>, vector<32x1xf32>, vector<4x1xf32> -> vector<4x1xf32>
      %c0_66 = arith.constant 0 : index
      %c0_67 = arith.constant 0 : index
      %124 = vector.load %arg26[%c0_66, %c0_67] : memref<1x1xf32, #tpu.memory_space<vmem>>, vector<1x1xf32>
      %125 = vector.broadcast %124 : vector<1x1xf32> to vector<4x1xf32>
      %126 = arith.addf %123, %125 : vector<4x1xf32>
      %cst_68 = arith.constant 0.000000e+00 : f32
      %127 = vector.broadcast %cst_68 : f32 to vector<4x1xf32>
      %128 = arith.subf %127, %126 : vector<4x1xf32>
      %129 = math.exp %128 : vector<4x1xf32>
      %cst_69 = arith.constant 1.000000e+00 : f32
      %130 = vector.broadcast %cst_69 : f32 to vector<4x1xf32>
      %131 = arith.addf %130, %129 : vector<4x1xf32>
      %cst_70 = arith.constant 1.000000e+00 : f32
      %132 = vector.broadcast %cst_70 : f32 to vector<4x1xf32>
      %133 = arith.divf %132, %131 : vector<4x1xf32>
      %c0_71 = arith.constant 0 : index
      %c0_72 = arith.constant 0 : index
      %134 = vector.load %arg27[%c0_71, %c0_72] : memref<1x1xf32, #tpu.memory_space<vmem>>, vector<1x1xf32>
      %cst_73 = arith.constant 1.000000e+00 : f32
      %135 = vector.broadcast %cst_73 : f32 to vector<4x1xf32>
      %136 = arith.addf %26, %135 : vector<4x1xf32>
      %137 = math.log %136 : vector<4x1xf32>
      %138 = vector.broadcast %134 : vector<1x1xf32> to vector<4x1xf32>
      %139 = arith.mulf %138, %137 : vector<4x1xf32>
      %140 = arith.addf %133, %139 : vector<4x1xf32>
      %141 = math.exp %133 : vector<4x1xf32>
      %142 = vector.broadcast %134 : vector<1x1xf32> to vector<4x1xf32>
      %143 = arith.divf %141, %142 : vector<4x1xf32>
      %144 = arith.addf %140, %143 : vector<4x1xf32>
      %145 = math.exp %140 : vector<4x1xf32>
      %146 = vector.broadcast %134 : vector<1x1xf32> to vector<4x1xf32>
      %147 = arith.divf %145, %146 : vector<4x1xf32>
      %148 = arith.subf %144, %147 : vector<4x1xf32>
      %c0_74 = arith.constant 0 : index
      %c0_75 = arith.constant 0 : index
      %149 = vector.load %arg29[%c0_74, %c0_75] : memref<1x1xf32, #tpu.memory_space<vmem>>, vector<1x1xf32>
      %150 = arith.mulf %148, %35 : vector<4x1xf32>
      %151 = arith.mulf %150, %41 : vector<4x1xf32>
      %cst_76 = arith.constant dense<0.000000e+00> : vector<1xf32>
      %152 = vector.multi_reduction <add>, %151, %cst_76 [0] : vector<4x1xf32> to vector<1xf32>
      %153 = vector.shape_cast %152 : vector<1xf32> to vector<1x1xf32>
      %cst_77 = arith.constant 0.000000e+00 : f32
      %154 = vector.broadcast %cst_77 : f32 to vector<1x1xf32>
      %155 = arith.subf %154, %153 : vector<1x1xf32>
      %156 = arith.addf %149, %155 : vector<1x1xf32>
      %c0_78 = arith.constant 0 : index
      %c0_79 = arith.constant 0 : index
      %157 = vector.load %arg29[%c0_78, %c0_79] : memref<1x1xf32, #tpu.memory_space<vmem>>, vector<1x1xf32>
      tpu.vector_store %arg29[%c0_78, %c0_79], %156 {strides = array<i32>} : memref<1x1xf32, #tpu.memory_space<vmem>>, vector<1x1xf32>,
    } else {
    }
    %c6_i32 = arith.constant 6 : i32
    %6 = arith.cmpi slt, %arg0, %c6_i32 : i32
    %7 = arith.extui %6 : i1 to i32
    %c0_i32_3 = arith.constant 0 : i32
    %8 = arith.cmpi ne, %7, %c0_i32_3 : i32
    scf.if %8 {
      %c5_i32 = arith.constant 5 : i32
      %9 = arith.minsi %arg0, %c5_i32 : i32
      %10 = arith.index_cast %9 : i32 to index
      %c0 = arith.constant 0 : index
      %c0_4 = arith.constant 0 : index
      %11 = vector.load %arg2[%10, %c0, %c0_4] : memref<6x4x1xi32, #tpu.memory_space<vmem>>, vector<1x4x1xi32>
      %12 = vector.shape_cast %11 : vector<1x4x1xi32> to vector<4x1xi32>
      %13 = tpu.iota {dimensions = array<i32: 1>} : vector<4x13xi32>
      %14 = vector.broadcast %12 : vector<4x1xi32> to vector<4x13xi32>
      %15 = arith.cmpi eq, %13, %14 : vector<4x13xi32>
      %c0_5 = arith.constant 0 : index
      %c0_6 = arith.constant 0 : index
      %16 = vector.load %arg35[%c0_5, %c0_6] : memref<4x13xf32, #tpu.memory_space<vmem>>, vector<4x13xf32>
      %cst = arith.constant -1.000000e+30 : f32
      %17 = vector.broadcast %cst : f32 to vector<4x13xf32>
      %18 = arith.select %15, %17, %16 : vector<4x13xi1>, vector<4x13xf32>
      %c0_7 = arith.constant 0 : index
      %c0_8 = arith.constant 0 : index
      %19 = vector.load %arg35[%c0_7, %c0_8] : memref<4x13xf32, #tpu.memory_space<vmem>>, vector<4x13xf32>
      tpu.vector_store %arg35[%c0_7, %c0_8], %18 {strides = array<i32>} : memref<4x13xf32, #tpu.memory_space<vmem>>, vector<4x13xf32>,
      %c5_i32_9 = arith.constant 5 : i32
      %20 = arith.minsi %arg0, %c5_i32_9 : i32
      %21 = arith.index_cast %20 : i32 to index
      %c0_10 = arith.constant 0 : index
      %c0_11 = arith.constant 0 : index
      %22 = vector.load %arg3[%21, %c0_10, %c0_11] : memref<6x4x16xf32, #tpu.memory_space<vmem>>, vector<1x4x16xf32>
      %23 = vector.shape_cast %22 : vector<1x4x16xf32> to vector<4x16xf32>
      %c0_12 = arith.constant 0 : index
      %c0_13 = arith.constant 0 : index
      %24 = vector.load %arg4[%c0_12, %c0_13] : memref<16x32xf32, #tpu.memory_space<vmem>>, vector<16x32xf32>
      %cst_14 = arith.constant dense<0.000000e+00> : vector<4x32xf32>
      %25 = tpu.matmul %23, %24, %cst_14 {dimension_numbers = #tpu.dot_dimension_numbers<[1], [0], [0], [1], [0, 0, 1, 1], [], []>} : vector<4x16xf32>, vector<16x32xf32>, vector<4x32xf32> -> vector<4x32xf32>
      %c0_15 = arith.constant 0 : index
      %c0_16 = arith.constant 0 : index
      %26 = vector.load %arg5[%c0_15, %c0_16] : memref<1x32xf32, #tpu.memory_space<vmem>>, vector<1x32xf32>
      %27 = vector.broadcast %26 : vector<1x32xf32> to vector<4x32xf32>
      %28 = arith.addf %25, %27 : vector<4x32xf32>
      %cst_17 = arith.constant 0.000000e+00 : f32
      %29 = vector.broadcast %cst_17 : f32 to vector<4x32xf32>
      %30 = arith.cmpf ogt, %28, %29 : vector<4x32xf32>
      %cst_18 = arith.constant 0.000000e+00 : f32
      %31 = vector.broadcast %cst_18 : f32 to vector<4x32xf32>
      %32 = arith.minimumf %28, %31 : vector<4x32xf32>
      %33 = math.exp %32 : vector<4x32xf32>
      %cst_19 = arith.constant 1.000000e+00 : f32
      %34 = vector.broadcast %cst_19 : f32 to vector<4x32xf32>
      %35 = arith.subf %33, %34 : vector<4x32xf32>
      %36 = arith.select %30, %28, %35 : vector<4x32xi1>, vector<4x32xf32>
      %c0_20 = arith.constant 0 : index
      %c0_21 = arith.constant 0 : index
      %37 = vector.load %arg8[%c0_20, %c0_21] : memref<32x32xf32, #tpu.memory_space<vmem>>, vector<32x32xf32>
      %cst_22 = arith.constant dense<0.000000e+00> : vector<4x32xf32>
      %38 = tpu.matmul %36, %37, %cst_22 {dimension_numbers = #tpu.dot_dimension_numbers<[1], [0], [0], [1], [0, 0, 1, 1], [], []>} : vector<4x32xf32>, vector<32x32xf32>, vector<4x32xf32> -> vector<4x32xf32>
      %c0_23 = arith.constant 0 : index
      %c0_24 = arith.constant 0 : index
      %39 = vector.load %arg9[%c0_23, %c0_24] : memref<1x32xf32, #tpu.memory_space<vmem>>, vector<1x32xf32>
      %40 = vector.broadcast %39 : vector<1x32xf32> to vector<4x32xf32>
      %41 = arith.addf %38, %40 : vector<4x32xf32>
      %c5_i32_25 = arith.constant 5 : i32
      %42 = arith.minsi %arg0, %c5_i32_25 : i32
      %43 = arith.index_cast %42 : i32 to index
      %c0_26 = arith.constant 0 : index
      %c0_27 = arith.constant 0 : index
      %44 = vector.load %arg1[%43, %c0_26, %c0_27] : memref<6x4x1xf32, #tpu.memory_space<vmem>>, vector<1x4x1xf32>
      %45 = vector.shape_cast %44 : vector<1x4x1xf32> to vector<4x1xf32>
      %46 = vector.shape_cast %45 : vector<4x1xf32> to vector<1x4x1xf32>
      %c0_28 = arith.constant 0 : index
      %c0_29 = arith.constant 0 : index
      %c0_30 = arith.constant 0 : index
      %47 = vector.load %arg1[%c0_28, %c0_29, %c0_30] : memref<6x4x1xf32, #tpu.memory_space<vmem>>, vector<6x4x1xf32>
      %48 = vector.broadcast %46 : vector<1x4x1xf32> to vector<6x4x1xf32>
      %49 = arith.subf %48, %47 : vector<6x4x1xf32>
      %cst_31 = arith.constant 1.000000e+01 : f32
      %50 = vector.broadcast %cst_31 : f32 to vector<6x4x1xf32>
      %51 = arith.mulf %49, %50 : vector<6x4x1xf32>
      %cst_32 = arith.constant 1.200000e+02 : f32
      %52 = vector.broadcast %cst_32 : f32 to vector<6x4x1xf32>
      %53 = arith.divf %51, %52 : vector<6x4x1xf32>
      %54 = math.floor %53 : vector<6x4x1xf32>
      %cst_33 = arith.constant 0.000000e+00 : f32
      %cst_34 = arith.constant 1.000000e+01 : f32
      %55 = vector.broadcast %cst_33 : f32 to vector<6x4x1xf32>
      %56 = arith.maximumf %55, %54 : vector<6x4x1xf32>
      %57 = vector.broadcast %cst_34 : f32 to vector<6x4x1xf32>
      %58 = arith.minimumf %57, %56 : vector<6x4x1xf32>
      %59 = arith.fptosi %58 : vector<6x4x1xf32> to vector<6x4x1xi32>
      %c0_35 = arith.constant 0 : index
      %c0_36 = arith.constant 0 : index
      %60 = vector.load %arg17[%c0_35, %c0_36] : memref<1x11xf32, #tpu.memory_space<vmem>>, vector<1x11xf32>
      %cst_37 = arith.constant 0.000000e+00 : f32
      %61 = vector.broadcast %cst_37 : f32 to vector<6x4x1xf32>
      %c0_38 = arith.constant 0 : index
      %c0_39 = arith.constant 0 : index
      %62 = vector.load %arg18[%c0_38, %c0_39] : memref<1x1xf32, #tpu.memory_space<vmem>>, vector<1x1xf32>
      %63 = vector.shape_cast %62 : vector<1x1xf32> to vector<1x1x1xf32>
      %64 = vector.broadcast %63 : vector<1x1x1xf32> to vector<6x4x1xf32>
      %65 = arith.addf %61, %64 : vector<6x4x1xf32>
      %c0_i32_40 = arith.constant 0 : i32
      %66 = vector.broadcast %c0_i32_40 : i32 to vector<6x4x1xi32>
      %67 = arith.cmpi eq, %59, %66 : vector<6x4x1xi32>
      %68 = vector.extract_strided_slice %60 {offsets = [0, 0], sizes = [1, 1], strides = [1, 1]} : vector<1x11xf32> to vector<1x1xf32>
      %cst_41 = arith.constant 0.000000e+00 : f32
      %69 = vector.shape_cast %68 : vector<1x1xf32> to vector<1x1x1xf32>
      %70 = vector.broadcast %69 : vector<1x1x1xf32> to vector<6x4x1xf32>
      %71 = vector.broadcast %cst_41 : f32 to vector<6x4x1xf32>
      %72 = arith.select %67, %70, %71 : vector<6x4x1xi1>, vector<6x4x1xf32>
      %73 = arith.addf %65, %72 : vector<6x4x1xf32>
      %c1_i32 = arith.constant 1 : i32
      %74 = vector.broadcast %c1_i32 : i32 to vector<6x4x1xi32>
      %75 = arith.cmpi eq, %59, %74 : vector<6x4x1xi32>
      %76 = vector.extract_strided_slice %60 {offsets = [0, 1], sizes = [1, 1], strides = [1, 1]} : vector<1x11xf32> to vector<1x1xf32>
      %cst_42 = arith.constant 0.000000e+00 : f32
      %77 = vector.shape_cast %76 : vector<1x1xf32> to vector<1x1x1xf32>
      %78 = vector.broadcast %77 : vector<1x1x1xf32> to vector<6x4x1xf32>
      %79 = vector.broadcast %cst_42 : f32 to vector<6x4x1xf32>
      %80 = arith.select %75, %78, %79 : vector<6x4x1xi1>, vector<6x4x1xf32>
      %81 = arith.addf %73, %80 : vector<6x4x1xf32>
      %c2_i32 = arith.constant 2 : i32
      %82 = vector.broadcast %c2_i32 : i32 to vector<6x4x1xi32>
      %83 = arith.cmpi eq, %59, %82 : vector<6x4x1xi32>
      %84 = vector.extract_strided_slice %60 {offsets = [0, 2], sizes = [1, 1], strides = [1, 1]} : vector<1x11xf32> to vector<1x1xf32>
      %cst_43 = arith.constant 0.000000e+00 : f32
      %85 = vector.shape_cast %84 : vector<1x1xf32> to vector<1x1x1xf32>
      %86 = vector.broadcast %85 : vector<1x1x1xf32> to vector<6x4x1xf32>
      %87 = vector.broadcast %cst_43 : f32 to vector<6x4x1xf32>
      %88 = arith.select %83, %86, %87 : vector<6x4x1xi1>, vector<6x4x1xf32>
      %89 = arith.addf %81, %88 : vector<6x4x1xf32>
      %c3_i32 = arith.constant 3 : i32
      %90 = vector.broadcast %c3_i32 : i32 to vector<6x4x1xi32>
      %91 = arith.cmpi eq, %59, %90 : vector<6x4x1xi32>
      %92 = vector.extract_strided_slice %60 {offsets = [0, 3], sizes = [1, 1], strides = [1, 1]} : vector<1x11xf32> to vector<1x1xf32>
      %cst_44 = arith.constant 0.000000e+00 : f32
      %93 = vector.shape_cast %92 : vector<1x1xf32> to vector<1x1x1xf32>
      %94 = vector.broadcast %93 : vector<1x1x1xf32> to vector<6x4x1xf32>
      %95 = vector.broadcast %cst_44 : f32 to vector<6x4x1xf32>
      %96 = arith.select %91, %94, %95 : vector<6x4x1xi1>, vector<6x4x1xf32>
      %97 = arith.addf %89, %96 : vector<6x4x1xf32>
      %c4_i32 = arith.constant 4 : i32
      %98 = vector.broadcast %c4_i32 : i32 to vector<6x4x1xi32>
      %99 = arith.cmpi eq, %59, %98 : vector<6x4x1xi32>
      %100 = vector.extract_strided_slice %60 {offsets = [0, 4], sizes = [1, 1], strides = [1, 1]} : vector<1x11xf32> to vector<1x1xf32>
      %cst_45 = arith.constant 0.000000e+00 : f32
      %101 = vector.shape_cast %100 : vector<1x1xf32> to vector<1x1x1xf32>
      %102 = vector.broadcast %101 : vector<1x1x1xf32> to vector<6x4x1xf32>
      %103 = vector.broadcast %cst_45 : f32 to vector<6x4x1xf32>
      %104 = arith.select %99, %102, %103 : vector<6x4x1xi1>, vector<6x4x1xf32>
      %105 = arith.addf %97, %104 : vector<6x4x1xf32>
      %c5_i32_46 = arith.constant 5 : i32
      %106 = vector.broadcast %c5_i32_46 : i32 to vector<6x4x1xi32>
      %107 = arith.cmpi eq, %59, %106 : vector<6x4x1xi32>
      %108 = vector.extract_strided_slice %60 {offsets = [0, 5], sizes = [1, 1], strides = [1, 1]} : vector<1x11xf32> to vector<1x1xf32>
      %cst_47 = arith.constant 0.000000e+00 : f32
      %109 = vector.shape_cast %108 : vector<1x1xf32> to vector<1x1x1xf32>
      %110 = vector.broadcast %109 : vector<1x1x1xf32> to vector<6x4x1xf32>
      %111 = vector.broadcast %cst_47 : f32 to vector<6x4x1xf32>
      %112 = arith.select %107, %110, %111 : vector<6x4x1xi1>, vector<6x4x1xf32>
      %113 = arith.addf %105, %112 : vector<6x4x1xf32>
      %c6_i32_48 = arith.constant 6 : i32
      %114 = vector.broadcast %c6_i32_48 : i32 to vector<6x4x1xi32>
      %115 = arith.cmpi eq, %59, %114 : vector<6x4x1xi32>
      %116 = vector.extract_strided_slice %60 {offsets = [0, 6], sizes = [1, 1], strides = [1, 1]} : vector<1x11xf32> to vector<1x1xf32>
      %cst_49 = arith.constant 0.000000e+00 : f32
      %117 = vector.shape_cast %116 : vector<1x1xf32> to vector<1x1x1xf32>
      %118 = vector.broadcast %117 : vector<1x1x1xf32> to vector<6x4x1xf32>
      %119 = vector.broadcast %cst_49 : f32 to vector<6x4x1xf32>
      %120 = arith.select %115, %118, %119 : vector<6x4x1xi1>, vector<6x4x1xf32>
      %121 = arith.addf %113, %120 : vector<6x4x1xf32>
      %c7_i32 = arith.constant 7 : i32
      %122 = vector.broadcast %c7_i32 : i32 to vector<6x4x1xi32>
      %123 = arith.cmpi eq, %59, %122 : vector<6x4x1xi32>
      %124 = vector.extract_strided_slice %60 {offsets = [0, 7], sizes = [1, 1], strides = [1, 1]} : vector<1x11xf32> to vector<1x1xf32>
      %cst_50 = arith.constant 0.000000e+00 : f32
      %125 = vector.shape_cast %124 : vector<1x1xf32> to vector<1x1x1xf32>
      %126 = vector.broadcast %125 : vector<1x1x1xf32> to vector<6x4x1xf32>
      %127 = vector.broadcast %cst_50 : f32 to vector<6x4x1xf32>
      %128 = arith.select %123, %126, %127 : vector<6x4x1xi1>, vector<6x4x1xf32>
      %129 = arith.addf %121, %128 : vector<6x4x1xf32>
      %c8_i32 = arith.constant 8 : i32
      %130 = vector.broadcast %c8_i32 : i32 to vector<6x4x1xi32>
      %131 = arith.cmpi eq, %59, %130 : vector<6x4x1xi32>
      %132 = vector.extract_strided_slice %60 {offsets = [0, 8], sizes = [1, 1], strides = [1, 1]} : vector<1x11xf32> to vector<1x1xf32>
      %cst_51 = arith.constant 0.000000e+00 : f32
      %133 = vector.shape_cast %132 : vector<1x1xf32> to vector<1x1x1xf32>
      %134 = vector.broadcast %133 : vector<1x1x1xf32> to vector<6x4x1xf32>
      %135 = vector.broadcast %cst_51 : f32 to vector<6x4x1xf32>
      %136 = arith.select %131, %134, %135 : vector<6x4x1xi1>, vector<6x4x1xf32>
      %137 = arith.addf %129, %136 : vector<6x4x1xf32>
      %c9_i32 = arith.constant 9 : i32
      %138 = vector.broadcast %c9_i32 : i32 to vector<6x4x1xi32>
      %139 = arith.cmpi eq, %59, %138 : vector<6x4x1xi32>
      %140 = vector.extract_strided_slice %60 {offsets = [0, 9], sizes = [1, 1], strides = [1, 1]} : vector<1x11xf32> to vector<1x1xf32>
      %cst_52 = arith.constant 0.000000e+00 : f32
      %141 = vector.shape_cast %140 : vector<1x1xf32> to vector<1x1x1xf32>
      %142 = vector.broadcast %141 : vector<1x1x1xf32> to vector<6x4x1xf32>
      %143 = vector.broadcast %cst_52 : f32 to vector<6x4x1xf32>
      %144 = arith.select %139, %142, %143 : vector<6x4x1xi1>, vector<6x4x1xf32>
      %145 = arith.addf %137, %144 : vector<6x4x1xf32>
      %c10_i32 = arith.constant 10 : i32
      %146 = vector.broadcast %c10_i32 : i32 to vector<6x4x1xi32>
      %147 = arith.cmpi eq, %59, %146 : vector<6x4x1xi32>
      %148 = vector.extract_strided_slice %60 {offsets = [0, 10], sizes = [1, 1], strides = [1, 1]} : vector<1x11xf32> to vector<1x1xf32>
      %cst_53 = arith.constant 0.000000e+00 : f32
      %149 = vector.shape_cast %148 : vector<1x1xf32> to vector<1x1x1xf32>
      %150 = vector.broadcast %149 : vector<1x1x1xf32> to vector<6x4x1xf32>
      %151 = vector.broadcast %cst_53 : f32 to vector<6x4x1xf32>
      %152 = arith.select %147, %150, %151 : vector<6x4x1xi1>, vector<6x4x1xf32>
      %153 = arith.addf %145, %152 : vector<6x4x1xf32>
      %c0_54 = arith.constant 0 : index
      %c0_55 = arith.constant 0 : index
      %c0_56 = arith.constant 0 : index
      %154 = vector.load %arg34[%c0_54, %c0_55, %c0_56] : memref<6x4x1xf32, #tpu.memory_space<vmem>>, vector<6x4x1xf32>
      tpu.vector_store %arg34[%c0_54, %c0_55, %c0_56], %153 {strides = array<i32>} : memref<6x4x1xf32, #tpu.memory_space<vmem>>, vector<6x4x1xf32>,
      %c0_57 = arith.constant 0 : index
      %c0_58 = arith.constant 0 : index
      %155 = vector.load %arg6[%c0_57, %c0_58] : memref<32x32xf32, #tpu.memory_space<vmem>>, vector<32x32xf32>
      %cst_59 = arith.constant dense<0.000000e+00> : vector<4x32xf32>
      %156 = tpu.matmul %36, %155, %cst_59 {dimension_numbers = #tpu.dot_dimension_numbers<[1], [0], [0], [1], [0, 0, 1, 1], [], []>} : vector<4x32xf32>, vector<32x32xf32>, vector<4x32xf32> -> vector<4x32xf32>
      %c0_60 = arith.constant 0 : index
      %c0_61 = arith.constant 0 : index
      %157 = vector.load %arg7[%c0_60, %c0_61] : memref<1x32xf32, #tpu.memory_space<vmem>>, vector<1x32xf32>
      %158 = vector.broadcast %157 : vector<1x32xf32> to vector<4x32xf32>
      %159 = arith.addf %156, %158 : vector<4x32xf32>
      %160 = vector.shape_cast %159 : vector<4x32xf32> to vector<1x4x32xf32>
      %c0_62 = arith.constant 0 : index
      %c0_63 = arith.constant 0 : index
      %c0_64 = arith.constant 0 : index
      %161 = vector.load %arg31[%c0_62, %c0_63, %c0_64] : memref<6x4x32xf32, #tpu.memory_space<vmem>>, vector<6x4x32xf32>
      %162 = vector.broadcast %160 : vector<1x4x32xf32> to vector<6x4x32xf32>
      %163 = arith.mulf %162, %161 : vector<6x4x32xf32>
      %cst_65 = arith.constant dense<0.000000e+00> : vector<6x4xf32>
      %164 = vector.multi_reduction <add>, %163, %cst_65 [2] : vector<6x4x32xf32> to vector<6x4xf32>
      %165 = vector.shape_cast %164 : vector<6x4xf32> to vector<6x4x1xf32>
      %166 = tpu.iota {dimensions = array<i32: 0>} : vector<6x4x1xi32>
      %167 = vector.broadcast %arg0 : i32 to vector<6x4x1xi32>
      %168 = arith.cmpi slt, %166, %167 : vector<6x4x1xi32>
      %cst_66 = arith.constant -1.000000e+30 : f32
      %169 = vector.broadcast %cst_66 : f32 to vector<6x4x1xf32>
      %170 = arith.select %168, %165, %169 : vector<6x4x1xi1>, vector<6x4x1xf32>
      %cst_67 = arith.constant dense<0xFF800000> : vector<4x1xf32>
      %171 = vector.multi_reduction <maximumf>, %170, %cst_67 [0] : vector<6x4x1xf32> to vector<4x1xf32>
      %172 = vector.shape_cast %171 : vector<4x1xf32> to vector<1x4x1xf32>
      %173 = vector.broadcast %172 : vector<1x4x1xf32> to vector<6x4x1xf32>
      %174 = arith.subf %170, %173 : vector<6x4x1xf32>
      %175 = math.exp %174 : vector<6x4x1xf32>
      %cst_68 = arith.constant dense<0.000000e+00> : vector<4x1xf32>
      %176 = vector.multi_reduction <add>, %175, %cst_68 [0] : vector<6x4x1xf32> to vector<4x1xf32>
      %177 = vector.shape_cast %176 : vector<4x1xf32> to vector<1x4x1xf32>
      %178 = tpu.reciprocal %177 {approx = true} : vector<1x4x1xf32> -> vector<1x4x1xf32>
      %179 = vector.broadcast %178 : vector<1x4x1xf32> to vector<6x4x1xf32>
      %180 = arith.mulf %175, %179 : vector<6x4x1xf32>
      %c0_69 = arith.constant 0 : index
      %c0_70 = arith.constant 0 : index
      %c0_71 = arith.constant 0 : index
      %181 = vector.load %arg30[%c0_69, %c0_70, %c0_71] : memref<6x4x32xf32, #tpu.memory_space<vmem>>, vector<6x4x32xf32>
      %182 = vector.broadcast %180 : vector<6x4x1xf32> to vector<6x4x32xf32>
      %183 = arith.mulf %182, %181 : vector<6x4x32xf32>
      %cst_72 = arith.constant dense<0.000000e+00> : vector<4x32xf32>
      %184 = vector.multi_reduction <add>, %183, %cst_72 [0] : vector<6x4x32xf32> to vector<4x32xf32>
      %c0_73 = arith.constant 0 : index
      %c0_74 = arith.constant 0 : index
      %185 = vector.load %arg10[%c0_73, %c0_74] : memref<32x1xf32, #tpu.memory_space<vmem>>, vector<32x1xf32>
      %cst_75 = arith.constant dense<0.000000e+00> : vector<4x1xf32>
      %186 = tpu.matmul %36, %185, %cst_75 {dimension_numbers = #tpu.dot_dimension_numbers<[1], [0], [0], [1], [0, 0, 1, 1], [], []>} : vector<4x32xf32>, vector<32x1xf32>, vector<4x1xf32> -> vector<4x1xf32>
      %c0_76 = arith.constant 0 : index
      %c0_77 = arith.constant 0 : index
      %187 = vector.load %arg11[%c0_76, %c0_77] : memref<32x1xf32, #tpu.memory_space<vmem>>, vector<32x1xf32>
      %cst_78 = arith.constant dense<0.000000e+00> : vector<4x1xf32>
      %188 = tpu.matmul %184, %187, %cst_78 {dimension_numbers = #tpu.dot_dimension_numbers<[1], [0], [0], [1], [0, 0, 1, 1], [], []>} : vector<4x32xf32>, vector<32x1xf32>, vector<4x1xf32> -> vector<4x1xf32>
      %189 = arith.addf %186, %188 : vector<4x1xf32>
      %c0_79 = arith.constant 0 : index
      %c0_80 = arith.constant 0 : index
      %190 = vector.load %arg12[%c0_79, %c0_80] : memref<1x1xf32, #tpu.memory_space<vmem>>, vector<1x1xf32>
      %191 = vector.broadcast %190 : vector<1x1xf32> to vector<4x1xf32>
      %192 = arith.addf %189, %191 : vector<4x1xf32>
      %cst_81 = arith.constant 0.000000e+00 : f32
      %193 = vector.broadcast %cst_81 : f32 to vector<4x1xf32>
      %194 = arith.subf %193, %192 : vector<4x1xf32>
      %195 = math.exp %194 : vector<4x1xf32>
      %cst_82 = arith.constant 1.000000e+00 : f32
      %196 = vector.broadcast %cst_82 : f32 to vector<4x1xf32>
      %197 = arith.addf %196, %195 : vector<4x1xf32>
      %cst_83 = arith.constant 1.000000e+00 : f32
      %198 = vector.broadcast %cst_83 : f32 to vector<4x1xf32>
      %199 = arith.divf %198, %197 : vector<4x1xf32>
      %c0_i32_84 = arith.constant 0 : i32
      %200 = arith.cmpi sgt, %arg0, %c0_i32_84 : i32
      %201 = vector.broadcast %199 : vector<4x1xf32> to vector<4x32xf32>
      %202 = arith.mulf %201, %36 : vector<4x32xf32>
      %cst_85 = arith.constant 1.000000e+00 : f32
      %203 = vector.broadcast %cst_85 : f32 to vector<4x1xf32>
      %204 = arith.subf %203, %199 : vector<4x1xf32>
      %205 = vector.broadcast %204 : vector<4x1xf32> to vector<4x32xf32>
      %206 = arith.mulf %205, %184 : vector<4x32xf32>
      %207 = arith.addf %202, %206 : vector<4x32xf32>
      %208 = arith.select %200, %207, %36 : vector<4x32xf32>
      %c0_86 = arith.constant 0 : index
      %c0_87 = arith.constant 0 : index
      %209 = vector.load %arg13[%c0_86, %c0_87] : memref<32x32xf32, #tpu.memory_space<vmem>>, vector<32x32xf32>
      %cst_88 = arith.constant dense<0.000000e+00> : vector<4x32xf32>
      %210 = tpu.matmul %208, %209, %cst_88 {dimension_numbers = #tpu.dot_dimension_numbers<[1], [0], [0], [1], [0, 0, 1, 1], [], []>} : vector<4x32xf32>, vector<32x32xf32>, vector<4x32xf32> -> vector<4x32xf32>
      %c0_89 = arith.constant 0 : index
      %c0_90 = arith.constant 0 : index
      %211 = vector.load %arg14[%c0_89, %c0_90] : memref<1x32xf32, #tpu.memory_space<vmem>>, vector<1x32xf32>
      %212 = vector.broadcast %211 : vector<1x32xf32> to vector<4x32xf32>
      %213 = arith.addf %210, %212 : vector<4x32xf32>
      %cst_91 = arith.constant 0.000000e+00 : f32
      %214 = vector.broadcast %cst_91 : f32 to vector<4x32xf32>
      %215 = arith.cmpf ogt, %213, %214 : vector<4x32xf32>
      %cst_92 = arith.constant 0.000000e+00 : f32
      %216 = vector.broadcast %cst_92 : f32 to vector<4x32xf32>
      %217 = arith.minimumf %213, %216 : vector<4x32xf32>
      %218 = math.exp %217 : vector<4x32xf32>
      %cst_93 = arith.constant 1.000000e+00 : f32
      %219 = vector.broadcast %cst_93 : f32 to vector<4x32xf32>
      %220 = arith.subf %218, %219 : vector<4x32xf32>
      %221 = arith.select %215, %213, %220 : vector<4x32xi1>, vector<4x32xf32>
      %c0_94 = arith.constant 0 : index
      %c0_95 = arith.constant 0 : index
      %222 = vector.load %arg15[%c0_94, %c0_95] : memref<32x1xf32, #tpu.memory_space<vmem>>, vector<32x1xf32>
      %cst_96 = arith.constant dense<0.000000e+00> : vector<4x1xf32>
      %223 = tpu.matmul %221, %222, %cst_96 {dimension_numbers = #tpu.dot_dimension_numbers<[1], [0], [0], [1], [0, 0, 1, 1], [], []>} : vector<4x32xf32>, vector<32x1xf32>, vector<4x1xf32> -> vector<4x1xf32>
      %c0_97 = arith.constant 0 : index
      %c0_98 = arith.constant 0 : index
      %224 = vector.load %arg16[%c0_97, %c0_98] : memref<1x1xf32, #tpu.memory_space<vmem>>, vector<1x1xf32>
      %225 = vector.broadcast %224 : vector<1x1xf32> to vector<4x1xf32>
      %226 = arith.addf %223, %225 : vector<4x1xf32>
      %227 = arith.index_cast %arg0 : i32 to index
      %c0_99 = arith.constant 0 : index
      %c0_100 = arith.constant 0 : index
      %228 = vector.load %arg30[%227, %c0_99, %c0_100] : memref<6x4x32xf32, #tpu.memory_space<vmem>>, vector<1x4x32xf32>
      %229 = vector.shape_cast %228 : vector<1x4x32xf32> to vector<4x32xf32>
      %230 = vector.shape_cast %36 : vector<4x32xf32> to vector<1x4x32xf32>
      tpu.vector_store %arg30[%227, %c0_99, %c0_100], %230 {strides = array<i32>} : memref<6x4x32xf32, #tpu.memory_space<vmem>>, vector<1x4x32xf32>,
      %231 = arith.index_cast %arg0 : i32 to index
      %c0_101 = arith.constant 0 : index
      %c0_102 = arith.constant 0 : index
      %232 = vector.load %arg31[%231, %c0_101, %c0_102] : memref<6x4x32xf32, #tpu.memory_space<vmem>>, vector<1x4x32xf32>
      %233 = vector.shape_cast %232 : vector<1x4x32xf32> to vector<4x32xf32>
      %234 = vector.shape_cast %41 : vector<4x32xf32> to vector<1x4x32xf32>
      tpu.vector_store %arg31[%231, %c0_101, %c0_102], %234 {strides = array<i32>} : memref<6x4x32xf32, #tpu.memory_space<vmem>>, vector<1x4x32xf32>,
      %235 = arith.index_cast %arg0 : i32 to index
      %c0_103 = arith.constant 0 : index
      %c0_104 = arith.constant 0 : index
      %236 = vector.load %arg32[%235, %c0_103, %c0_104] : memref<6x4x32xf32, #tpu.memory_space<vmem>>, vector<1x4x32xf32>
      %237 = vector.shape_cast %236 : vector<1x4x32xf32> to vector<4x32xf32>
      %238 = vector.shape_cast %208 : vector<4x32xf32> to vector<1x4x32xf32>
      tpu.vector_store %arg32[%235, %c0_103, %c0_104], %238 {strides = array<i32>} : memref<6x4x32xf32, #tpu.memory_space<vmem>>, vector<1x4x32xf32>,
      %239 = arith.index_cast %arg0 : i32 to index
      %c0_105 = arith.constant 0 : index
      %c0_106 = arith.constant 0 : index
      %240 = vector.load %arg33[%239, %c0_105, %c0_106] : memref<6x4x1xf32, #tpu.memory_space<vmem>>, vector<1x4x1xf32>
      %241 = vector.shape_cast %240 : vector<1x4x1xf32> to vector<4x1xf32>
      %242 = vector.shape_cast %226 : vector<4x1xf32> to vector<1x4x1xf32>
      tpu.vector_store %arg33[%239, %c0_105, %c0_106], %242 {strides = array<i32>} : memref<6x4x1xf32, #tpu.memory_space<vmem>>, vector<1x4x1xf32>,
    } else {
    }
    return
  }
  func.func @transform_0(%arg0: i32) -> (i32, i32, i32) {
    %c0_i32 = arith.constant 0 : i32
    %c0_i32_0 = arith.constant 0 : i32
    %c0_i32_1 = arith.constant 0 : i32
    %c0_i32_2 = arith.constant 0 : i32
    return %c0_i32, %c0_i32_0, %c0_i32_1 : i32, i32, i32
  }
  func.func @transform_1(%arg0: i32) -> (i32, i32, i32) {
    %c0_i32 = arith.constant 0 : i32
    %c0_i32_0 = arith.constant 0 : i32
    %c0_i32_1 = arith.constant 0 : i32
    %c0_i32_2 = arith.constant 0 : i32
    return %c0_i32, %c0_i32_0, %c0_i32_1 : i32, i32, i32
  }
  func.func @transform_2(%arg0: i32) -> (i32, i32, i32) {
    %c0_i32 = arith.constant 0 : i32
    %c0_i32_0 = arith.constant 0 : i32
    %c0_i32_1 = arith.constant 0 : i32
    %c0_i32_2 = arith.constant 0 : i32
    return %c0_i32, %c0_i32_0, %c0_i32_1 : i32, i32, i32
  }
  func.func @transform_3(%arg0: i32) -> (i32, i32) {
    %c0_i32 = arith.constant 0 : i32
    %c0_i32_0 = arith.constant 0 : i32
    %c0_i32_1 = arith.constant 0 : i32
    return %c0_i32, %c0_i32_0 : i32, i32
  }
  func.func @transform_4(%arg0: i32) -> (i32, i32) {
    %c0_i32 = arith.constant 0 : i32
    %c0_i32_0 = arith.constant 0 : i32
    %c0_i32_1 = arith.constant 0 : i32
    return %c0_i32, %c0_i32_0 : i32, i32
  }
  func.func @transform_5(%arg0: i32) -> (i32, i32) {
    %c0_i32 = arith.constant 0 : i32
    %c0_i32_0 = arith.constant 0 : i32
    %c0_i32_1 = arith.constant 0 : i32
    return %c0_i32, %c0_i32_0 : i32, i32
  }
  func.func @transform_6(%arg0: i32) -> (i32, i32) {
    %c0_i32 = arith.constant 0 : i32
    %c0_i32_0 = arith.constant 0 : i32
    %c0_i32_1 = arith.constant 0 : i32
    return %c0_i32, %c0_i32_0 : i32, i32
  }
  func.func @transform_7(%arg0: i32) -> (i32, i32) {
    %c0_i32 = arith.constant 0 : i32
    %c0_i32_0 = arith.constant 0 : i32
    %c0_i32_1 = arith.constant 0 : i32
    return %c0_i32, %c0_i32_0 : i32, i32
  }
  func.func @transform_8(%arg0: i32) -> (i32, i32) {
    %c0_i32 = arith.constant 0 : i32
    %c0_i32_0 = arith.constant 0 : i32
    %c0_i32_1 = arith.constant 0 : i32
    return %c0_i32, %c0_i32_0 : i32, i32
  }
  func.func @transform_9(%arg0: i32) -> (i32, i32) {
    %c0_i32 = arith.constant 0 : i32
    %c0_i32_0 = arith.constant 0 : i32
    %c0_i32_1 = arith.constant 0 : i32
    return %c0_i32, %c0_i32_0 : i32, i32
  }
  func.func @transform_10(%arg0: i32) -> (i32, i32) {
    %c0_i32 = arith.constant 0 : i32
    %c0_i32_0 = arith.constant 0 : i32
    %c0_i32_1 = arith.constant 0 : i32
    return %c0_i32, %c0_i32_0 : i32, i32
  }
  func.func @transform_11(%arg0: i32) -> (i32, i32) {
    %c0_i32 = arith.constant 0 : i32
    %c0_i32_0 = arith.constant 0 : i32
    %c0_i32_1 = arith.constant 0 : i32
    return %c0_i32, %c0_i32_0 : i32, i32
  }
  func.func @transform_12(%arg0: i32) -> (i32, i32) {
    %c0_i32 = arith.constant 0 : i32
    %c0_i32_0 = arith.constant 0 : i32
    %c0_i32_1 = arith.constant 0 : i32
    return %c0_i32, %c0_i32_0 : i32, i32
  }
  func.func @transform_13(%arg0: i32) -> (i32, i32) {
    %c0_i32 = arith.constant 0 : i32
    %c0_i32_0 = arith.constant 0 : i32
    %c0_i32_1 = arith.constant 0 : i32
    return %c0_i32, %c0_i32_0 : i32, i32
  }
  func.func @transform_14(%arg0: i32) -> (i32, i32) {
    %c0_i32 = arith.constant 0 : i32
    %c0_i32_0 = arith.constant 0 : i32
    %c0_i32_1 = arith.constant 0 : i32
    return %c0_i32, %c0_i32_0 : i32, i32
  }
  func.func @transform_15(%arg0: i32) -> (i32, i32) {
    %c0_i32 = arith.constant 0 : i32
    %c0_i32_0 = arith.constant 0 : i32
    %c0_i32_1 = arith.constant 0 : i32
    return %c0_i32, %c0_i32_0 : i32, i32
  }
  func.func @transform_16(%arg0: i32) -> (i32, i32) {
    %c0_i32 = arith.constant 0 : i32
    %c0_i32_0 = arith.constant 0 : i32
    %c0_i32_1 = arith.constant 0 : i32
    return %c0_i32, %c0_i32_0 : i32, i32
  }
  func.func @transform_17(%arg0: i32) -> (i32, i32) {
    %c0_i32 = arith.constant 0 : i32
    %c0_i32_0 = arith.constant 0 : i32
    %c0_i32_1 = arith.constant 0 : i32
    return %c0_i32, %c0_i32_0 : i32, i32
  }
  func.func @transform_18(%arg0: i32) -> (i32, i32) {
    %c0_i32 = arith.constant 0 : i32
    %c0_i32_0 = arith.constant 0 : i32
    %c0_i32_1 = arith.constant 0 : i32
    return %c0_i32, %c0_i32_0 : i32, i32
  }
  func.func @transform_19(%arg0: i32) -> (i32, i32) {
    %c0_i32 = arith.constant 0 : i32
    %c0_i32_0 = arith.constant 0 : i32
    %c0_i32_1 = arith.constant 0 : i32
    return %c0_i32, %c0_i32_0 : i32, i32
  }
  func.func @transform_20(%arg0: i32) -> (i32, i32) {
    %c0_i32 = arith.constant 0 : i32
    %c0_i32_0 = arith.constant 0 : i32
    %c0_i32_1 = arith.constant 0 : i32
    return %c0_i32, %c0_i32_0 : i32, i32
  }
  func.func @transform_21(%arg0: i32) -> (i32, i32) {
    %c0_i32 = arith.constant 0 : i32
    %c0_i32_0 = arith.constant 0 : i32
    %c0_i32_1 = arith.constant 0 : i32
    return %c0_i32, %c0_i32_0 : i32, i32
  }
  func.func @transform_22(%arg0: i32) -> (i32, i32) {
    %c0_i32 = arith.constant 0 : i32
    %c0_i32_0 = arith.constant 0 : i32
    %c0_i32_1 = arith.constant 0 : i32
    return %c0_i32, %c0_i32_0 : i32, i32
  }
  func.func @transform_23(%arg0: i32) -> (i32, i32) {
    %c0_i32 = arith.constant 0 : i32
    %c0_i32_0 = arith.constant 0 : i32
    %c0_i32_1 = arith.constant 0 : i32
    return %c0_i32, %c0_i32_0 : i32, i32
  }
  func.func @transform_24(%arg0: i32) -> (i32, i32) {
    %c0_i32 = arith.constant 0 : i32
    %c0_i32_0 = arith.constant 0 : i32
    %c0_i32_1 = arith.constant 0 : i32
    return %c0_i32, %c0_i32_0 : i32, i32
  }
  func.func @transform_25(%arg0: i32) -> (i32, i32) {
    %c0_i32 = arith.constant 0 : i32
    %c0_i32_0 = arith.constant 0 : i32
    %c0_i32_1 = arith.constant 0 : i32
    return %c0_i32, %c0_i32_0 : i32, i32
  }
  func.func @transform_26(%arg0: i32) -> (i32, i32) {
    %c0_i32 = arith.constant 0 : i32
    %c0_i32_0 = arith.constant 0 : i32
    %c0_i32_1 = arith.constant 0 : i32
    return %c0_i32, %c0_i32_0 : i32, i32
  }
  func.func @transform_27(%arg0: i32) -> (i32, i32) {
    %c0_i32 = arith.constant 0 : i32
    %c0_i32_0 = arith.constant 0 : i32
    %c0_i32_1 = arith.constant 0 : i32
    return %c0_i32, %c0_i32_0 : i32, i32
  }
  func.func @transform_28(%arg0: i32) -> (i32, i32) {
    %c0_i32 = arith.constant 0 : i32
    %c0_i32_0 = arith.constant 0 : i32
    %c0_i32_1 = arith.constant 0 : i32
    return %c0_i32, %c0_i32_0 : i32, i32
  }
}

</mosaic_0001>

<bundles_post_ra>
// kernel: tpu_custom_call.1
= control target key start
LH: loop header
LB: loop body
LE: loop exit
PB: predicated region body
PF: predicated region fallthrough
CT: control target
= control target key end

     0   :  { %s3989_s0 = inlined_call_operand.vmem [shape: f32[6,4,1], index: 0, kind: input, shape index: {}]   ;;  %s3990_s1 = inlined_call_operand.vmem [shape: s32[6,4,1], index: 1, kind: input, shape index: {}]   ;;  %s3991_s2 = inlined_call_operand.vmem [shape: f32[6,4,16], index: 2, kind: input, shape index: {}]   ;;  %s3992_s3 = inlined_call_operand.vmem [shape: f32[16,32], index: 3, kind: input, shape index: {}]   ;;  %s3993_s4 = inlined_call_operand.vmem [shape: f32[1,32], index: 4, kind: input, shape index: {}]   ;;  %s3994_s5 = inlined_call_operand.vmem [shape: f32[32,32], index: 5, kind: input, shape index: {}]   ;;  %s3995_s6 = inlined_call_operand.vmem [shape: f32[1,32], index: 6, kind: input, shape index: {}]   ;;  %s3996_s7 = inlined_call_operand.vmem [shape: f32[32,32], index: 7, kind: input, shape index: {}]   ;;  %s3997_s8 = inlined_call_operand.vmem [shape: f32[1,32], index: 8, kind: input, shape index: {}]   ;;  %s3998_s9 = inlined_call_operand.vmem [shape: f32[32,1], index: 9, kind: input, shape index: {}]   ;;  %s3999_s10 = inlined_call_operand.vmem [shape: f32[32,1], index: 10, kind: input, shape index: {}]   ;;  %s4000_s11 = inlined_call_operand.<no memory space> [shape: f32[1,1], index: 11, kind: input, shape index: {}]   ;;  %s4001_s12 = inlined_call_operand.vmem [shape: f32[32,32], index: 12, kind: input, shape index: {}]   ;;  %s4002_s13 = inlined_call_operand.vmem [shape: f32[1,32], index: 13, kind: input, shape index: {}]   ;;  %s4003_s14 = inlined_call_operand.vmem [shape: f32[32,1], index: 14, kind: input, shape index: {}]   ;;  %s4004_s16 = inlined_call_operand.vmem [shape: f32[1,11], index: 16, kind: input, shape index: {}]   ;;  %s4005_s18 = inlined_call_operand.vmem [shape: f32[32,32], index: 18, kind: input, shape index: {}]   ;;  %s4006_s19 = inlined_call_operand.vmem [shape: f32[1,32], index: 19, kind: input, shape index: {}]   ;;  %s4007_s20 = inlined_call_operand.vmem [shape: f32[32,32], index: 20, kind: input, shape index: {}]   ;;  %s4008_s21 = inlined_call_operand.vmem [shape: f32[1,32], index: 21, kind: input, shape index: {}]   ;;  %s4009_s22 = inlined_call_operand.vmem [shape: f32[32,13], index: 22, kind: input, shape index: {}]   ;;  %s4010_s23 = inlined_call_operand.vmem [shape: f32[1,13], index: 23, kind: input, shape index: {}]   ;;  %s4011_s24 = inlined_call_operand.vmem [shape: f32[32,1], index: 24, kind: input, shape index: {}]   ;;  %s4012_s27 = inlined_call_operand.hbm [shape: f32[1,1], index: 27, kind: output, shape index: {0}]   ;;  %s4013_s28 = inlined_call_operand.hbm [shape: f32[1,1], index: 28, kind: output, shape index: {1}]   ;;  %s4014_s15 = inlined_call_operand.<no memory space> [shape: f32[1,1], index: 15, kind: input, shape index: {}]   ;;  %s4015_s17 = inlined_call_operand.<no memory space> [shape: f32[1,1], index: 17, kind: input, shape index: {}]   ;;  %s4016_s25 = inlined_call_operand.<no memory space> [shape: f32[1,1], index: 25, kind: input, shape index: {}]   ;;  %s4017_s26 = inlined_call_operand.<no memory space> [shape: f32[1,1], index: 26, kind: input, shape index: {}]  }
   0x1   :  { %4032 = sst [smem:[#allocation19_spill]] %s3989_s0  ;;  %v36_v1 = vstv %s4014_s15  ;;  %v38_v2 = vstv %s4015_s17  ;;  %v40_v3 = vstv %s4016_s25  ;;  %v42_v4 = vstv %s4017_s26 }
   0x2   :  { %4033 = sst [smem:[#allocation20_spill]] %s3990_s1  ;;  %37 = vst [vmem:[#allocation9] sm:$0x1] %v36_v1  ;;  %39 = vst [vmem:[#allocation10] sm:$0x1] %v38_v2 }
   0x3   :  { %4034 = sst [smem:[#allocation21_spill]] %s3991_s2  ;;  %41 = vst [vmem:[#allocation11] sm:$0x1] %v40_v3  ;;  %43 = vst [vmem:[#allocation12] sm:$0x1] %v42_v4 }
   0x4   :  { %4035 = sst [smem:[#allocation22_spill]] %s3992_s3 }
   0x5   :  { %4036 = sst [smem:[#allocation23_spill]] %s3993_s4 }
   0x6   :  { %4037 = sst [smem:[#allocation24_spill]] %s3994_s5 }
   0x7   :  { %4038 = sst [smem:[#allocation25_spill]] %s3995_s6 }
   0x8   :  { %4039 = sst [smem:[#allocation26_spill]] %s3996_s7 }
   0x9   :  { %4040 = sst [smem:[#allocation27_spill]] %s3997_s8 }
   0xa   :  { %4041 = sst [smem:[#allocation28_spill]] %s3998_s9 }
   0xb   :  { %4042 = sst [smem:[#allocation29_spill]] %s3999_s10 }
   0xc   :  { %4043 = sst [smem:[#allocation30_spill]] %s4000_s11 }
   0xd   :  { %4044 = sst [smem:[#allocation31_spill]] %s4001_s12  ;;  %s4045_s9 = sld [smem:[#allocation30_spill]] }
  0x13   :  { %v34_v0 = vstv %s4045_s9 }
  0x14   :  { %35 = vst [vmem:[#allocation8] sm:$0x1] %v34_v0 }
  0x15   :  { %44 = vsyncpa [#allocation14], 0 }
  0x16   :  { %45 = vsyncpa [#allocation16], 0  ;;  %s3238_s15 = smov 0  }
  0x17 LB: > { %s3244_s17 = sadd.s32 4294967295, %s3055_s15   ;;  %p2596_p0 = scmp.ge.s32.totalorder %s3055_s15, 1  ;;  %s3055_s15 = sphi %s3238_s15, %s51_s15  }
  0x18   : > { %p757_p1 = scmp.lt.s32.totalorder %s3055_s15, 8 }
  0x1a   : > { %p758_p2 = pnand %p2596_p0, %p757_p1 }
  0x1b   : > { %p2597_p3 = scmp.ne.s32.totalorder (!%p758_p2), %s3244_s17, 0 }
  0x1c   : > { %761 = sbr.rel (%p758_p2) target bundleno = 2841 (0xb19), region = 128 }
  0x23   : > { %824 = sbr.rel (%p2597_p3) target bundleno = 53 (0x35), region = 132  ;;  %vm825_vm0 = vcmask (!%p2597_p3), 257024   ;;  %vm844_vm1 = vcmask (!%p2597_p3), 3072   ;;  %vm857_vm2 = vcmask (!%p2597_p3), 101376   ;;  %v3057_v5 = vmov (!%p2597_p3), 0.0  }
  0x24   : > { %826 = vst.msk [vmem:[#allocation2] sm:$0xf] (!%p2597_p3), %vm825_vm0, %v3057_v5  ;;  %827 = vst.msk [vmem:[#allocation2 + $0x4] sm:$0xf] (!%p2597_p3), %vm825_vm0, %v3057_v5  ;;  %vm859_vm3 = vcmask (!%p2597_p3), 0  }
  0x25   : > { %828 = vst.msk [vmem:[#allocation2 + $0x8] sm:$0xf] (!%p2597_p3), %vm825_vm0, %v3057_v5  ;;  %829 = vst.msk [vmem:[#allocation2 + $0xc] sm:$0xf] (!%p2597_p3), %vm825_vm0, %v3057_v5 }
  0x26   : > { %830 = vst.msk [vmem:[#allocation2 + $0x10] sm:$0xf] (!%p2597_p3), %vm825_vm0, %v3057_v5  ;;  %831 = vst.msk [vmem:[#allocation2 + $0x14] sm:$0xf] (!%p2597_p3), %vm825_vm0, %v3057_v5 }
  0x27   : > { %832 = vst.msk [vmem:[#allocation3] sm:$0xf] (!%p2597_p3), %vm825_vm0, %v3057_v5  ;;  %833 = vst.msk [vmem:[#allocation3 + $0x4] sm:$0xf] (!%p2597_p3), %vm825_vm0, %v3057_v5 }
  0x28   : > { %834 = vst.msk [vmem:[#allocation3 + $0x8] sm:$0xf] (!%p2597_p3), %vm825_vm0, %v3057_v5  ;;  %835 = vst.msk [vmem:[#allocation3 + $0xc] sm:$0xf] (!%p2597_p3), %vm825_vm0, %v3057_v5 }
  0x29   : > { %836 = vst.msk [vmem:[#allocation3 + $0x10] sm:$0xf] (!%p2597_p3), %vm825_vm0, %v3057_v5  ;;  %837 = vst.msk [vmem:[#allocation3 + $0x14] sm:$0xf] (!%p2597_p3), %vm825_vm0, %v3057_v5 }
  0x2a   : > { %838 = vst.msk [vmem:[#allocation4] sm:$0xf] %vm825_vm0, %v3057_v5  ;;  %839 = vst.msk [vmem:[#allocation4 + $0x4] sm:$0xf] %vm825_vm0, %v3057_v5 }
  0x2b   : > { %840 = vst.msk [vmem:[#allocation4 + $0x8] sm:$0xf] %vm825_vm0, %v3057_v5  ;;  %841 = vst.msk [vmem:[#allocation4 + $0xc] sm:$0xf] %vm825_vm0, %v3057_v5 }
  0x2c   : > { %842 = vst.msk [vmem:[#allocation4 + $0x10] sm:$0xf] %vm825_vm0, %v3057_v5  ;;  %843 = vst.msk [vmem:[#allocation4 + $0x14] sm:$0xf] %vm825_vm0, %v3057_v5 }
  0x2d   : > { %845 = vst.msk [vmem:[#allocation5] sm:$0xf] %vm844_vm1, %v3057_v5  ;;  %846 = vst.msk [vmem:[#allocation5 + $0x4] sm:$0xf] %vm844_vm1, %v3057_v5 }
  0x2e   : > { %847 = vst.msk [vmem:[#allocation5 + $0x8] sm:$0xf] %vm844_vm1, %v3057_v5  ;;  %848 = vst.msk [vmem:[#allocation5 + $0xc] sm:$0xf] %vm844_vm1, %v3057_v5 }
  0x2f   : > { %849 = vst.msk [vmem:[#allocation5 + $0x10] sm:$0xf] %vm844_vm1, %v3057_v5  ;;  %850 = vst.msk [vmem:[#allocation5 + $0x14] sm:$0xf] %vm844_vm1, %v3057_v5 }
  0x30   : > { %851 = vst.msk [vmem:[#allocation6] sm:$0xf] %vm844_vm1, %v3057_v5  ;;  %852 = vst.msk [vmem:[#allocation6 + $0x4] sm:$0xf] %vm844_vm1, %v3057_v5 }
  0x31   : > { %853 = vst.msk [vmem:[#allocation6 + $0x8] sm:$0xf] %vm844_vm1, %v3057_v5  ;;  %854 = vst.msk [vmem:[#allocation6 + $0xc] sm:$0xf] %vm844_vm1, %v3057_v5 }
  0x32   : > { %855 = vst.msk [vmem:[#allocation6 + $0x10] sm:$0xf] %vm844_vm1, %v3057_v5  ;;  %856 = vst.msk [vmem:[#allocation6 + $0x14] sm:$0xf] %vm844_vm1, %v3057_v5 }
  0x33   : > { %858 = vst.msk [vmem:[#allocation7] sm:$0xf] %vm857_vm2, %v3057_v5 }
  0x34   : > { %860 = vst.msk [vmem:[#allocation13] sm:$0x1] %vm859_vm3, %v3057_v5  ;;  %861 = vst.msk [vmem:[#allocation15] sm:$0x1] %vm859_vm3, %v3057_v5 }
  0x35 PF: > { %p862_p4 = scmp.gt.s32.totalorder %s3244_s17, 0  ;;  %p2598_p5 = scmp.le.s32.totalorder %s3244_s17, 0 }
  0x36   : > { %v3283_v6 = vstv (!%p2598_p5), %s3244_s17  ;;  %v904_v7 = vld [vmem:[#allocation5] sm:$0xf] (!%p2598_p5)  ;;  %v905_v8 = vld [vmem:[#allocation5 + $0x4] sm:$0xf] (!%p2598_p5)  ;;  %vm916_vm4 = vcmask (!%p2598_p5), 3072   ;;  %v3058_v9 = vmov (!%p2598_p5), 0  }
  0x37   : > { %865 = sbr.rel (%p2598_p5) target bundleno = 1291 (0x50b), region = 136  ;;  %2926 = vset.pattern.permute.xlu1 (!%p2598_p5), %v3058_v9  ;;  %2925 = vset.pattern.permute.xlu0 (!%p2598_p5), %v3058_v9  ;;  %vm898_vm5 = vcmp.gt.s32.totalorder (!%p2598_p5), %v3283_v6, 0  ;;  %vm899_vm6 = vcmp.gt.s32.totalorder (!%p2598_p5), %v3283_v6, 1  ;;  %vm900_vm7 = vcmp.gt.s32.totalorder (!%p2598_p5), %v3283_v6, 2  ;;  %vm901_vm8 = vcmp.gt.s32.totalorder (!%p2598_p5), %v3283_v6, 3  ;;  %p867_p6 = scmp.lt.s32.totalorder (!%p2598_p5), %s3244_s17, 5 }
  0x38   : > { %v906_v10 = vld [vmem:[#allocation5 + $0x8] sm:$0xf] (!%p2598_p5)  ;;  %vm902_vm9 = vcmp.gt.s32.totalorder (!%p2598_p5), %v3283_v6, 4  ;;  %vm903_vm10 = vcmp.gt.s32.totalorder (!%p2598_p5), %v3283_v6, 5  ;;  %v907_v11 = vld [vmem:[#allocation5 + $0xc] sm:$0xf] (!%p2598_p5) }
  0x39   : > { %v908_v12 = vld [vmem:[#allocation5 + $0x10] sm:$0xf] (!%p2598_p5)  ;;  %v909_v13 = vld [vmem:[#allocation5 + $0x14] sm:$0xf] (!%p2598_p5)  ;;  %v910_v14 = vsel (!%p2598_p5), %vm898_vm5, %v904_v7, -1e+30 }
  0x3a   : > { %v911_v15 = vsel (!%p2598_p5), %vm899_vm6, %v905_v8, -1e+30  ;;  %v912_v16 = vsel (!%p2598_p5), %vm900_vm7, %v906_v10, -1e+30  ;;  %v913_v17 = vsel (!%p2598_p5), %vm901_vm8, %v907_v11, -1e+30 }
  0x3b   : > { %v914_v18 = vsel (!%p2598_p5), %vm902_vm9, %v908_v12, -1e+30  ;;  %v915_v19 = vsel (!%p2598_p5), %vm903_vm10, %v909_v13, -1e+30  ;;  %v917_v20 = vsel (!%p2598_p5), %vm916_vm4, %v910_v14, -inf  ;;  %v918_v21 = vsel (!%p2598_p5), %vm916_vm4, %v911_v15, -inf }
  0x3c   : > { %v919_v22 = vsel (!%p2598_p5), %vm916_vm4, %v912_v16, -inf  ;;  %v920_v23 = vsel (!%p2598_p5), %vm916_vm4, %v913_v17, -inf  ;;  %v921_v24 = vsel (!%p2598_p5), %vm916_vm4, %v914_v18, -inf  ;;  %v923_v25 = vsel (!%p2598_p5), %vm916_vm4, %v915_v19, -inf  ;;  %v966_v60 = vld [vmem:[#allocation6 + $0x8] sm:$0xf] (!%p2598_p5) }
  0x3d   : > { %v922_v26 = vmax.f32 (!%p2598_p5), %v917_v20, %v921_v24  ;;  %v924_v27 = vmax.f32 (!%p2598_p5), %v918_v21, %v923_v25  ;;  %v926_v28 = vmax.f32 (!%p2598_p5), %v919_v22, %v920_v23  ;;  %v964_v62 = vld [vmem:[#allocation6] sm:$0xf] (!%p2598_p5)  ;;  %v967_v63 = vld [vmem:[#allocation6 + $0xc] sm:$0xf] (!%p2598_p5)  ;;  %v965_v0 = vld [vmem:[#allocation6 + $0x4] sm:$0xf] (!%p2598_p5) }
  0x3e   : > { %p866_p7 = scmp.eq.s32.totalorder %s3244_s17, 6  ;;  %v969_v12 = vld [vmem:[#allocation6 + $0x14] sm:$0xf]  ;;  %v968_v13 = vld [vmem:[#allocation6 + $0x10] sm:$0xf]  ;;  %s4046_s4 = sld [smem:[#allocation20_spill]] }
  0x3f   : > { %v925_v29 = vmax.f32 %v922_v26, %v924_v27  ;;  %s3318_s25 = scalar_select %p867_p6, %s3244_s17, 5  ;;  %v1036_v25 = vld [vmem:[%s4005_s18] sm:$0xff]  ;;  %v1037_v26 = vld [vmem:[%s4005_s18 + $0x8] sm:$0xff]  ;;  %v3059_v6 = vmov 0.0|0.0   ;;  %vm3060_vm12 = vmmov 0   ;;  %vm1024_vm13 = vcmask 257024  }
  0x40   : > { %s882_s26 = scalar_select %p866_p7, 1, 0  ;;  %2809 = vmatprep.subr.bf16.mxu0 %v3059_v6  ;;  %2815 = vmatprep.subr.bf16.mxu1 %v3059_v6  ;;  %vm1047_vm14 = vcmask 261120   ;;  %vm1337_vm3 = vcmask 0   ;;  %v2608_v24 = vld [vmem:[%s4010_s23] ss:$0 sm:$0xff] }
  0x41   : > { %v927_v30 = vmax.f32 %v925_v29, %v926_v28  ;;  %s2599_s7 = sshll.u32 %s3318_s25, 2  ;;  %v2810_v28 = vpack.c.bf16 %v1037_v26, %v1036_v25  ;;  %v1038_v29 = vld [vmem:[%s4005_s18 + $0x10] sm:$0xff]  ;;  %v1220_v25 = vld [vmem:[%s4009_s22 + $0x18] sm:$0xff]  ;;  %s2600_s6 = sadd.s32 4294967295, %s3244_s17 }
  0x42   : > { %v883_v20 = vstv %s882_s26  ;;  %p873_p8 = scmp.gt.s32.totalorder %s2600_s6, 0  ;;  %s4049_s26 = sld [smem:[#allocation19_spill]] }
  0x43   : > { %v928_v31 = vsub.f32 %v910_v14, %v927_v30  ;;  %v929_v32 = vsub.f32 %v911_v15, %v927_v30  ;;  %v930_v33 = vsub.f32 %v912_v16, %v927_v30  ;;  %v931_v34 = vsub.f32 %v913_v17, %v927_v30  ;;  %2811 = vmatpush3.bf16.msra.mxu0 %v2810_v28 }
  0x44   : > { %v932_v35 = vsub.f32 %v914_v18, %v927_v30  ;;  %v933_v36 = vsub.f32 %v915_v19, %v927_v30  ;;  %s878_s8 = scalar_lea.vmem %s4046_s4, %s2599_s7  ;;  %vm3338_vm11 = vcmp.eq.s32.totalorder %v883_v20, 1  ;;  %v1039_v30 = vld [vmem:[%s4005_s18 + $0x18] sm:$0xff]  ;;  %2812 = vmatprep.subr.bf16.mxu0 %v3059_v6  ;;  %v1217_v20 = vld [vmem:[%s4009_s22] sm:$0xff]  ;;  %s4090_s6 = smov (!%p873_p8, %s2600_s6), 0 }
  0x45   : > { %v934_v37 = vmul.f32 1.442695, %v928_v31  ;;  %v936_v38 = vmul.f32 1.442695, %v929_v32  ;;  %v938_v39 = vmul.f32 1.442695, %v930_v33  ;;  %v2813_v31 = vpack.c.bf16 %v1039_v30, %v1038_v29 }
  0x46   : > { %v940_v40 = vmul.f32 1.442695, %v931_v34  ;;  %v942_v41 = vmul.f32 1.442695, %v932_v35  ;;  %v944_v42 = vmul.f32 1.442695, %v933_v36 }
  0x47   : > { %2927 = vpow2.f32 %v934_v37  ;;  %v879_v23 = vld [vmem:[%s878_s8] sm:$0xf]  ;;  %2814 = vmatpush3.bf16.msra.mxu0 %v2813_v31  ;;  %v3061_v32 = vmov 0.0   ;;  %v982_v34 = vld [vmem:[#allocation4] sm:$0xf]  ;;  %s2601_s10 = sshll.u32 %s4090_s6, 2 }
  0x48   : > { %2929 = vpow2.f32 %v936_v38  ;;  %v896_v27 = vsel %vm3338_vm11, 12, %v879_v23  ;;  %2700 = vmatprep.mubr.msk.f32.mxu0 %vm3060_vm12, %v3061_v32  ;;  %2711 = vmatprep.mubr.msk.f32.mxu1 %vm3060_vm12, %v3061_v32  ;;  %v984_v36 = vld [vmem:[#allocation4 + $0x8] sm:$0xf]  ;;  %v983_v37 = vld [vmem:[#allocation4 + $0x4] sm:$0xf]  ;;  %s870_s12 = scalar_lea.vmem %s4049_s26, %s2599_s7  ;;  %s876_s8 = scalar_lea.vmem %s4049_s26, %s2601_s10 }
  0x49   : > { %2931 = vpow2.f32 %v938_v39  ;;  %2821 = vmatprep.subr.bf16.mxu0 %v3059_v6  ;;  %v985_v39 = vld [vmem:[#allocation4 + $0xc] sm:$0xf]  ;;  %v1219_v23 = vld [vmem:[%s4009_s22 + $0x10] sm:$0xff]  ;;  %v871_v31 = vld [vmem:[%s870_s12] sm:$0xf] }
  0x4a   : > { %2933 = vpow2.f32 %v940_v40  ;;  %v2825_v26 = vpack.c.bf16 %v1220_v25, %v1219_v23  ;;  %vm886_vm15 = vcmp.ge.f32.partialorder %v871_v31, 0.0  ;;  %vm887_vm0 = vcmp.lt.f32.partialorder %v871_v31, 0.0 }
  0x4b   : > { %2935 = vpow2.f32 %v942_v41  ;;  %vm888_vm1 = vmor %vm886_vm15, %vm887_vm0  ;;  %vm892_vm2 = vcmp.gt.f32.partialorder %v871_v31, 0.0 }
  0x4c   : > { %2937 = vpow2.f32 %v944_v42 }
  0x51   : > { %v2928_v43 = vpop.eup %2927 }
  0x52   : > { %v2930_v44 = vpop.eup %2929  ;;  %v946_v45 = vsel %vm916_vm4, %v2928_v43, 0.0 }
  0x53   : > { %v2932_v46 = vpop.eup %2931  ;;  %v947_v47 = vsel %vm916_vm4, %v2930_v44, 0.0 }
  0x54   : > { %v2934_v48 = vpop.eup %2933  ;;  %v948_v49 = vadd.f32 %v947_v47, %v946_v45  ;;  %v949_v50 = vsel %vm916_vm4, %v2932_v46, 0.0 }
  0x55   : > { %v2936_v51 = vpop.eup %2935  ;;  %v951_v52 = vsel %vm916_vm4, %v2934_v48, 0.0 }
  0x56   : > { %v2938_v53 = vpop.eup %2937  ;;  %v950_v54 = vadd.f32 %v949_v50, %v948_v49  ;;  %v953_v55 = vsel %vm916_vm4, %v2936_v51, 0.0  ;;  %v987_v49 = vld [vmem:[#allocation4 + $0x14] sm:$0xf] }
  0x57   : > { %v955_v57 = vsel %vm916_vm4, %v2938_v53, 0.0 }
  0x58   : > { %v952_v56 = vadd.f32 %v951_v52, %v950_v54 }
  0x5a   : > { %v954_v58 = vadd.f32 %v953_v55, %v952_v56 }
  0x5c   : > { %v956_v59 = vadd.f32 %v955_v57, %v954_v58 }
  0x5e   : > { %2939 = vrcp.f32 %v956_v59 }
  0x68   : > { %v2940_v61 = vpop.eup %2939 }
  0x69   : > { %v960_v1 = vmul.f32 %v2940_v61, %v2932_v46  ;;  %v958_v2 = vmul.f32 %v2940_v61, %v2928_v43  ;;  %v961_v3 = vmul.f32 %v2940_v61, %v2934_v48  ;;  %v959_v4 = vmul.f32 %v2940_v61, %v2930_v44  ;;  %v986_v44 = vld [vmem:[#allocation4 + $0x10] sm:$0xf] }
  0x6a   : > { %v963_v5 = vmul.f32 %v2940_v61, %v2938_v53  ;;  %v962_v7 = vmul.f32 %v2940_v61, %v2936_v51 }
  0x6b   : > { %v972_v8 = vmul.f32 %v966_v60, %v960_v1  ;;  %v970_v9 = vmul.f32 %v964_v62, %v958_v2  ;;  %v973_v10 = vmul.f32 %v967_v63, %v961_v3  ;;  %v971_v11 = vmul.f32 %v965_v0, %v959_v4  ;;  %v1127_v62 = vld [vmem:[%s4007_s20] sm:$0xff]  ;;  %v1128_v63 = vld [vmem:[%s4007_s20 + $0x8] sm:$0xff]  ;;  %v1129_v0 = vld [vmem:[%s4007_s20 + $0x10] sm:$0xff] }
  0x6c   : > { %v975_v18 = vmul.f32 %v969_v12, %v963_v5  ;;  %v974_v19 = vmul.f32 %v968_v13, %v962_v7  ;;  %v2816_v1 = vpack.c.bf16 %v1128_v63, %v1127_v62  ;;  %v1130_v2 = vld [vmem:[%s4007_s20 + $0x18] sm:$0xff]  ;;  %v2604_v4 = vld [vmem:[%s4006_s19] ss:$0 sm:$0xff]  ;;  %v2603_v63 = vsel %vm892_vm2, 1.0, %v3061_v32 }
  0x6d   : > { %v978_v14 = vsel %vm900_vm7, %v972_v8, 0.0  ;;  %v976_v15 = vsel %vm898_vm5, %v970_v9, 0.0  ;;  %v979_v16 = vsel %vm901_vm8, %v973_v10, 0.0  ;;  %v977_v17 = vsel %vm899_vm6, %v971_v11, 0.0  ;;  %v1339_v13 = vld [vmem:[%s4011_s24] sm:$0xff] }
  0x6e   : > { %1000 = vperm.xlu1 %2926, %v978_v14   ;;  %990 = vperm.xlu0 %2925, %v976_v15   ;;  %v981_v21 = vsel %vm903_vm10, %v975_v18, 0.0  ;;  %v980_v22 = vsel %vm902_vm9, %v974_v19, 0.0  ;;  %v2819_v3 = vpack.c.bf16 %v1130_v2, %v1129_v0  ;;  %v1340_v14 = vld [vmem:[%s4011_s24 + $0x8] sm:$0xff]  ;;  %vm1305_vm5 = vcmask 101376  }
  0x6f   : > { %2817 = vmatpush3.bf16.msra.mxu1 %v2816_v1  ;;  %v2828_v15 = vpack.c.bf16 %v1340_v14, %v1339_v13 }
  0x70   : > { %2818 = vmatprep.subr.bf16.mxu1 %v3059_v6 }
  0x72   : > { %1005 = vperm.xlu1 %2926, %v979_v16   ;;  %995 = vperm.xlu0 %2925, %v977_v17   ;;  %v1341_v16 = vld [vmem:[%s4011_s24 + $0x10] sm:$0xff]  ;;  %v1342_v17 = vld [vmem:[%s4011_s24 + $0x18] sm:$0xff] }
  0x73   : > { %2820 = vmatpush3.bf16.msra.mxu1 %v2819_v3  ;;  %v2831_v19 = vpack.c.bf16 %v1342_v17, %v1341_v16  ;;  %v1303_v17 = vlaneseq }
  0x74   : > { %2827 = vmatprep.subr.bf16.mxu1 %v3059_v6 }
  0x76   : > { %1015 = vperm.xlu1 %2926, %v981_v21   ;;  %1010 = vperm.xlu0 %2925, %v980_v22   ;;  %v1218_v21 = vld [vmem:[%s4009_s22 + $0x8] sm:$0xff] }
  0x77   : > { %v2822_v22 = vpack.c.bf16 %v1218_v21, %v1217_v20  ;;  %v1304_v20 = vand.u32 127, %v1303_v17 }
  0x7a   : > { %1319 = vperm.xlu1 %2926, %v896_v27   ;;  %v2606_v27 = vld [vmem:[%s4008_s21] ss:$0 sm:$0xff] }
  0xed   : > { %v1001_v33 = vpop.permute.xlu1 %1000  ;;  %v991_v35 = vpop.permute.xlu0 %990 }
  0xee   : > { %v1018_v38 = vmul.f32 %v991_v35, %v982_v34  ;;  %v1020_v42 = vmul.f32 %v1001_v33, %v984_v36  ;;  %v877_v33 = vld [vmem:[%s876_s8] sm:$0xf]  ;;  %v2610_v35 = vld [vmem:[#allocation11] ss:$0 sm:$0xff] }
  0xef   : > { %v880_v36 = vsub.f32 120.0, %v877_v33 }
  0xf0   : > { %v1025_v45 = vsel %vm1024_vm13, %v1018_v38, 0.0  ;;  %v1028_v52 = vsel %vm1024_vm13, %v1020_v42, 0.0 }
  0xf1   : > { %v1006_v40 = vpop.permute.xlu1 %1005  ;;  %v996_v41 = vpop.permute.xlu0 %995 }
  0xf2   : > { %v1019_v43 = vmul.f32 %v996_v41, %v983_v37  ;;  %v1021_v46 = vmul.f32 %v1006_v40, %v985_v39  ;;  %v881_v37 = vsub.f32 %v871_v31, %v877_v33 }
  0xf4   : > { %v1026_v47 = vsel %vm1024_vm13, %v1019_v43, 0.0  ;;  %v1030_v55 = vsel %vm1024_vm13, %v1021_v46, 0.0  ;;  %v885_v41 = vsel %vm3338_vm11, %v880_v36, %v881_v37 }
  0xf5   : > { %v1027_v48 = vadd.f32 %v1026_v47, %v1025_v45  ;;  %v1016_v50 = vpop.permute.xlu1 %1015  ;;  %v1011_v51 = vpop.permute.xlu0 %1010 }
  0xf6   : > { %v1022_v53 = vmul.f32 %v1011_v51, %v986_v44  ;;  %v1023_v56 = vmul.f32 %v1016_v50, %v987_v49  ;;  %v1427_v44 = vadd.f32 1.0, %v885_v41 }
  0xf7   : > { %v1029_v54 = vadd.f32 %v1028_v52, %v1027_v48  ;;  %v2612_v52 = vld [vmem:[#allocation12] ss:$0 sm:$0xff] }
  0xf8   : > { %v1032_v58 = vsel %vm1024_vm13, %v1022_v53, 0.0  ;;  %v1034_v60 = vsel %vm1024_vm13, %v1023_v56, 0.0 }
  0xf9   : > { %v1031_v57 = vadd.f32 %v1030_v55, %v1029_v54  ;;  %v1320_v23 = vpop.permute.xlu1 %1319 }
  0xfa   : > { %vm1321_vm6 = vcmp.eq.s32.totalorder %v1304_v20, %v1320_v23 }
  0xfb   : > { %v1033_v59 = vadd.f32 %v1032_v58, %v1031_v57 }
  0xfd   : > { %v1035_v61 = vadd.f32 %v1034_v60, %v1033_v59  ;;  %v2602_v60 = vsel %vm888_vm1, 1.0, %v3061_v32 }
  0xfe   : > { %v891_v2 = vsel %vm3338_vm11, 1.0, %v2602_v60 }
  0xff   : > { %2701 = vmatmul.mubr.msk.f32.vlgmr.msra.gmra.mrb[0].mxu0 %vm1047_vm14, %v1035_v61 }
 0x100   : > { %2722 = vmatprep.mubr.msk.f32.mxu0 %vm3060_vm12, %v3061_v32  ;;  %2823 = vmatpush3.bf16.msra.mxu0 %v2822_v22 }
 0x101   : > { %2824 = vmatprep.subr.bf16.mxu0 %v3059_v6 }
 0x104   : > { %2826 = vmatpush3.bf16.msra.mxu0 %v2825_v26 }
 0x1d2   : > { %v1117_v5 = vpop.f32.mrb[0].mxu0 }
 0x1d3   : > { %v1118_v7 = vadd.f32 %v2604_v4, %v1117_v5  ;;  %v2702_v8 = vpop.f32.mrb[1].mxu0  ;;  %v895_v4 = vsel %vm3338_vm11, 0.0, %v2603_v63 }
 0x1d5   : > { %v1121_v9 = vsub.f32 0.0, %v1118_v7 }
 0x1d7   : > { %v1122_v10 = vmul.f32 1.442695, %v1121_v9 }
 0x1d9   : > { %2941 = vpow2.f32 %v1122_v10 }
 0x1e3   : > { %v2942_v11 = vpop.eup %2941 }
 0x1e4   : > { %v1124_v12 = vadd.f32 1.0, %v2942_v11 }
 0x1e6   : > { %2943 = vrcp.f32 %v1124_v12 }
 0x1f0   : > { %v2944_v18 = vpop.eup %2943 }
 0x1f1   : > { %2712 = vmatmul.mubr.msk.f32.vlgmr.msra.gmra.mrb[0].mxu1 %vm1047_vm14, %v2944_v18 }
 0x1f2   : > { %2829 = vmatpush3.bf16.msra.mxu1 %v2828_v15  ;;  %2733 = vmatprep.mubr.msk.f32.mxu1 %vm3060_vm12, %v3061_v32  ;;  %v1447_v32 = vld [vmem:[#allocation15] sm:$0x1] }
 0x1f3   : > { %2830 = vmatprep.subr.bf16.mxu1 %v3059_v6 }
 0x1f6   : > { %2832 = vmatpush3.bf16.msra.mxu1 %v2831_v19  ;;  %v1301_v19 = vld [vmem:[#allocation7] sm:$0xf] }
 0x1f9   : > { %2734 = vmatmul.mubr.msk.f32.vlgmr.msra.gmra.mrb[2].mxu1 %vm1047_vm14, %v1035_v61 }
 0x2c4   : > { %v1207_v28 = vpop.f32.mrb[0].mxu1 }
 0x2c5   : > { %v1208_v6 = vadd.f32 %v2606_v27, %v1207_v28  ;;  %v2713_v29 = vpop.f32.mrb[1].mxu1 }
 0x2c7   : > { %v1211_v30 = vsub.f32 0.0, %v1208_v6 }
 0x2c9   : > { %v1212_v34 = vmul.f32 1.442695, %v1211_v30 }
 0x2cb   : > { %2945 = vpow2.f32 %v1212_v34 }
 0x2cc   : > { %v1416_v38 = vpop.f32.mrb[2].mxu1 }
 0x2cd   : > { %v1417_v39 = vadd.f32 %v2610_v35, %v1416_v38  ;;  %v2735_v40 = vpop.f32.mrb[3].mxu1 }
 0x2cf   : > { %v1420_v42 = vsub.f32 0.0, %v1417_v39 }
 0x2d1   : > { %v1421_v43 = vmul.f32 1.442695, %v1420_v42 }
 0x2d3   : > { %2947 = vpow2.f32 %v1421_v43 }
 0x2d4   : > { %2949 = vlog2.f32 %v1427_v44 }
 0x2d5   : > { %v2946_v45 = vpop.eup %2945 }
 0x2d6   : > { %v1214_v46 = vadd.f32 1.0, %v2946_v45 }
 0x2d8   : > { %2951 = vrcp.f32 %v1214_v46 }
 0x2dd   : > { %v2948_v47 = vpop.eup %2947 }
 0x2de   : > { %v1423_v48 = vadd.f32 1.0, %v2948_v47  ;;  %v2950_v49 = vpop.eup %2949  ;;  %v1327_v47 = vld [vmem:[#allocation13] sm:$0x1] }
 0x2df   : > { %v1429_v51 = vmul.f32 0.6931472, %v2950_v49 }
 0x2e0   : > { %2953 = vrcp.f32 %v1423_v48 }
 0x2e1   : > { %v1436_v53 = vmul.f32 %v2612_v52, %v1429_v51  ;;  %2955 = vrcp.f32 %v2612_v52 }
 0x2e2   : > { %v2952_v50 = vpop.eup %2951 }
 0x2e3   : > { %2723 = vmatmul.mubr.msk.f32.vlgmr.msra.gmra.mrb[2].mxu0 %vm1047_vm14, %v2952_v50 }
 0x2ea   : > { %v2954_v54 = vpop.eup %2953 }
 0x2eb   : > { %v1437_v55 = vadd.f32 %v2954_v54, %v1436_v53  ;;  %v1438_v56 = vmul.f32 1.442695, %v2954_v54  ;;  %v2956_v58 = vpop.eup %2955 }
 0x2ed   : > { %2957 = vpow2.f32 %v1438_v56  ;;  %v1443_v57 = vmul.f32 1.442695, %v1437_v55 }
 0x2ef   : > { %2959 = vpow2.f32 %v1443_v57 }
 0x2f7   : > { %v2958_v59 = vpop.eup %2957 }
 0x2f8   : > { %v1441_v61 = vmul.f32 %v2958_v59, %v2956_v58 }
 0x2f9   : > { %v2960_v62 = vpop.eup %2959 }
 0x2fa   : > { %v1442_v0 = vadd.f32 %v1441_v61, %v1437_v55  ;;  %v1445_v1 = vmul.f32 %v2960_v62, %v2956_v58 }
 0x2fc   : > { %v1446_v3 = vsub.f32 %v1442_v0, %v1445_v1 }
 0x2fe   : > { %v1448_v5 = vmul.f32 %v1446_v3, %v891_v2 }
 0x300   : > { %v1449_v7 = vmul.f32 %v1448_v5, %v895_v4 }
 0x302   : > { %v1450_v8 = vsel %vm916_vm4, %v1449_v7, 0.0 }
 0x303   : > { %v1451_v9 = vrot.slane %v1450_v8, 4 }
 0x305   : > { %v1452_v10 = vadd.f32 %v1451_v9, %v1450_v8 }
 0x307   : > { %v1453_v11 = vrot.slane %v1452_v10, 2 }
 0x309   : > { %v1454_v12 = vadd.f32 %v1453_v11, %v1452_v10 }
 0x30b   : > { %v1455_v13 = vrot.slane %v1454_v12, 1 }
 0x30d   : > { %v1456_v14 = vadd.f32 %v1455_v13, %v1454_v12 }
 0x30f   : > { %v1457_v15 = vsub.f32 0.0, %v1456_v14 }
 0x311   : > { %v1458_v16 = vadd.f32 %v1457_v15, %v1447_v32 }
 0x313   : > { %1459 = vst.msk [vmem:[#allocation15] sm:$0x1] %vm1337_vm3, %v1458_v16 }
 0x3b6   : > { %v1297_v18 = vpop.f32.mrb[2].mxu0 }
 0x3b7   : > { %v1298_v21 = vadd.f32 %v2608_v24, %v1297_v18  ;;  %v2724_v22 = vpop.f32.mrb[3].mxu0 }
 0x3b9   : > { %v1302_v25 = vadd.f32 %v1301_v19, %v1298_v21 }
 0x3bb   : > { %v1306_v26 = vsel %vm1305_vm5, %v1302_v25, -inf  ;;  %v1322_v27 = vsel %vm1321_vm6, %v1302_v25, 0.0 }
 0x3bc   : > { %1307 = vmax.xlane.f32.xlu0 %v1306_v26  ;;  %v1323_v28 = vsel %vm1305_vm5, %v1322_v27, 0.0 }
 0x3c0   : > { %1324 = vadd.xlane.f32.xlu0 %v1323_v28 }
 0x449   : > { %v1308_v6 = vpop.xlane.xlu0 %1307 }
 0x44a   : > { %v1309_v29 = vsub.f32 %v1302_v25, %v1308_v6 }
 0x44c   : > { %v1310_v30 = vmul.f32 1.442695, %v1309_v29 }
 0x44d   : > { %v1325_v38 = vpop.xlane.xlu0 %1324 }
 0x44e   : > { %2961 = vpow2.f32 %v1310_v30 }
 0x458   : > { %v2962_v31 = vpop.eup %2961 }
 0x459   : > { %v1312_v33 = vsel %vm1305_vm5, %v2962_v31, 0.0 }
 0x45a   : > { %1313 = vadd.xlane.f32.xlu1 %v1312_v33 }
 0x4e7   : > { %v1314_v34 = vpop.xlane.xlu1 %1313 }
 0x4e8   : > { %2963 = vlog2.f32 %v1314_v34 }
 0x4f2   : > { %v2964_v35 = vpop.eup %2963 }
 0x4f3   : > { %v1316_v36 = vmul.f32 0.6931472, %v2964_v35 }
 0x4f5   : > { %v1317_v37 = vadd.f32 %v1316_v36, %v1308_v6 }
 0x4f7   : > { %v1326_v39 = vsub.f32 %v1317_v37, %v1325_v38 }
 0x4f9   : > { %v1328_v40 = vmul.f32 %v1326_v39, %v891_v2 }
 0x4fb   : > { %v1329_v41 = vsel %vm916_vm4, %v1328_v40, 0.0 }
 0x4fc   : > { %v1330_v42 = vrot.slane %v1329_v41, 4 }
 0x4fe   : > { %v1331_v43 = vadd.f32 %v1330_v42, %v1329_v41 }
 0x500   : > { %v1332_v44 = vrot.slane %v1331_v43, 2 }
 0x502   : > { %v1333_v45 = vadd.f32 %v1332_v44, %v1331_v43 }
 0x504   : > { %v1334_v46 = vrot.slane %v1333_v45, 1 }
 0x506   : > { %v1335_v48 = vadd.f32 %v1334_v46, %v1333_v45 }
 0x508   : > { %v1336_v49 = vadd.f32 %v1335_v48, %v1327_v47 }
 0x50a   : > { %1338 = vst.msk [vmem:[#allocation13] sm:$0x1] %vm1337_vm3, %v1336_v49 }
 0x50b PF: > { %p2613_p9 = scmp.ge.s32.totalorder %s3244_s17, 6 }
 0x50c   : > { %s4050_s30 = sld [smem:[#allocation22_spill]] (!%p2613_p9)  ;;  %p1464_p10 = scmp.lt.s32.totalorder (!%p2613_p9), %s3244_s17, 5  ;;  %v3062_v52 = vmov (!%p2613_p9), 0.0|0.0   ;;  %vm3063_vm4 = vmmov (!%p2613_p9), 0   ;;  %v3064_v54 = vmov (!%p2613_p9), 0.0   ;;  %vm1490_vm7 = vcmask (!%p2613_p9), 130048  }
 0x50d   : > { %1463 = sbr.rel (%p2613_p9) target bundleno = 2793 (0xae9), region = 140  ;;  %2833 = vmatprep.subr.bf16.mxu0 (!%p2613_p9), %v3062_v52  ;;  %2740 = vmatprep.mubr.msk.f32.mxu0 (!%p2613_p9), %vm3063_vm4, %v3064_v54  ;;  %s4051_s2 = sld [smem:[#allocation21_spill]] (!%p2613_p9)  ;;  %vm4031_vm8 = vcmask (!%p2613_p9), 261120   ;;  %vm4030_vm9 = vcmask (!%p2613_p9), 257024   ;;  %v3512_v13 = vld [vmem:[#allocation2 + $0x8] sm:$0xf] (!%p2613_p9) }
 0x50e   : > { %2836 = vmatprep.subr.bf16.mxu1 (!%p2613_p9), %v3062_v52  ;;  %2751 = vmatprep.mubr.msk.f32.mxu1 (!%p2613_p9), %vm3063_vm4, %v3064_v54  ;;  %s4052_s4 = sld [smem:[#allocation24_spill]] (!%p2613_p9)  ;;  %s4053_s9 = sld [smem:[#allocation26_spill]] (!%p2613_p9)  ;;  %v3514_v32 = vld [vmem:[#allocation2] sm:$0xf] (!%p2613_p9)  ;;  %v3516_v15 = vld [vmem:[#allocation2 + $0x4] sm:$0xf] (!%p2613_p9) }
 0x50f   : > { %s4054_s5 = sld [smem:[#allocation23_spill]] (!%p2613_p9)  ;;  %v3518_v16 = vld [vmem:[#allocation2 + $0xc] sm:$0xf] (!%p2613_p9)  ;;  %v3520_v18 = vld [vmem:[#allocation2 + $0x10] sm:$0xf] (!%p2613_p9)  ;;  %s4056_s3 = sld [smem:[#allocation27_spill]] (!%p2613_p9) }
 0x510   : > { %v3522_v19 = vld [vmem:[#allocation2 + $0x14] sm:$0xf] (!%p2613_p9)  ;;  %s4057_s29 = sld [smem:[#allocation25_spill]] (!%p2613_p9)  ;;  %v2041_v27 = vld [vmem:[#allocation3 + $0x10] sm:$0xf] (!%p2613_p9)  ;;  %s4058_s8 = sld [smem:[#allocation29_spill]] (!%p2613_p9) }
 0x511   : > { %v2037_v28 = vld [vmem:[#allocation3] sm:$0xf] (!%p2613_p9)  ;;  %v2042_v6 = vld [vmem:[#allocation3 + $0x14] sm:$0xf] (!%p2613_p9)  ;;  %v2038_v29 = vld [vmem:[#allocation3 + $0x4] sm:$0xf] (!%p2613_p9) }
 0x512   : > { %v1481_v50 = vld [vmem:[%s4050_s30] sm:$0xff] (!%p2613_p9)  ;;  %v1482_v51 = vld [vmem:[%s4050_s30 + $0x8] sm:$0xff] (!%p2613_p9)  ;;  %vm2081_vm15 = vcmask (!%p2613_p9), 1043456   ;;  %s4059_s12 = sld [smem:[#allocation31_spill]] (!%p2613_p9)  ;;  %s3067_s1 = smov (!%p2613_p9), 126  }
 0x513   : > { %v2834_v53 = vpack.c.bf16 (!%p2613_p9), %v1482_v51, %v1481_v50  ;;  %v2040_v30 = vld [vmem:[#allocation3 + $0xc] sm:$0xf] (!%p2613_p9)  ;;  %v2039_v34 = vld [vmem:[#allocation3 + $0x8] sm:$0xf] (!%p2613_p9)  ;;  %s3069_s7 = smov (!%p2613_p9), 124   ;;  %s4060_s11 = sld [smem:[#allocation20_spill]] (!%p2613_p9) }
 0x514   : > { %s1465_s10 = scalar_select %p1464_p10, %s3244_s17, 5  ;;  %v1956_v56 = vld [vmem:[%s4052_s4] sm:$0xff]  ;;  %v1957_v57 = vld [vmem:[%s4052_s4 + $0x8] sm:$0xff]  ;;  %v1958_v62 = vld [vmem:[%s4052_s4 + $0x10] sm:$0xff] }
 0x515   : > { %2835 = vmatpush3.bf16.msra.mxu0 %v2834_v53  ;;  %v2843_v58 = vpack.c.bf16 %v1957_v57, %v1956_v56  ;;  %v1570_v59 = vld [vmem:[%s4053_s9] sm:$0xff]  ;;  %v1571_v60 = vld [vmem:[%s4053_s9 + $0x8] sm:$0xff]  ;;  %v1959_v63 = vld [vmem:[%s4052_s4 + $0x18] sm:$0xff]  ;;  %s3071_s4 = smov 122  }
 0x516   : > { %s3463_s0 = sshll.u32 %s1465_s10, 2  ;;  %2842 = vmatprep.subr.bf16.mxu0 %v3062_v52  ;;  %v2837_v61 = vpack.c.bf16 %v1571_v60, %v1570_v59  ;;  %v2846_v0 = vpack.c.bf16 %v1959_v63, %v1958_v62  ;;  %v1572_v1 = vld [vmem:[%s4053_s9 + $0x10] sm:$0xff]  ;;  %v1573_v2 = vld [vmem:[%s4053_s9 + $0x18] sm:$0xff]  ;;  %v2615_v4 = vld [vmem:[%s4054_s5] ss:$0 sm:$0xff]  ;;  %s4055_s10 = sld [smem:[#allocation28_spill]] }
 0x517   : > { %s1479_s26 = scalar_lea.vmem %s4051_s2, %s3463_s0  ;;  %v2840_v3 = vpack.c.bf16 %v1573_v2, %v1572_v1  ;;  %s3510_s2 = sshll.u32 %s3244_s17, 2  ;;  %v2618_v25 = vld [vmem:[%s4056_s3] ss:$0 sm:$0xff]  ;;  %v2157_v56 = vld [vmem:[%s4058_s8 + $0x8] sm:$0xff]  ;;  %v2158_v57 = vld [vmem:[%s4058_s8 + $0x10] sm:$0xff] }
 0x518   : > { %v1480_v55 = vld [vmem:[%s1479_s26] sm:$0xf]  ;;  %2838 = vmatpush3.bf16.msra.mxu1 %v2837_v61  ;;  %s2510_s25 = scalar_lea.vmem [#allocation2], %s3510_s2  ;;  %s2512_s26 = scalar_lea.vmem [#allocation3], %s3510_s2  ;;  %v2159_v59 = vld [vmem:[%s4058_s8 + $0x18] sm:$0xff]  ;;  %v2068_v61 = vstv %s3244_s17 }
 0x519   : > { %2741 = vmatmul.mubr.msk.f32.vlgmr.msra.gmra.mrb[0].mxu0 %vm1490_vm7, %v1480_v55  ;;  %2839 = vmatprep.subr.bf16.mxu1 %v3062_v52  ;;  %v2622_v26 = vld [vmem:[%s4057_s29] ss:$0 sm:$0xff]  ;;  %v2852_v60 = vpack.c.bf16 %v2159_v59, %v2158_v57  ;;  %vm2073_vm11 = vcmp.gt.s32.totalorder %v2068_v61, 4  ;;  %vm2069_vm12 = vcmp.gt.s32.totalorder %v2068_v61, 0  ;;  %vm2074_vm13 = vcmp.gt.s32.totalorder %v2068_v61, 5  ;;  %s3070_s5 = smov 123   ;;  %s1467_s29 = scalar_lea.vmem %s4060_s11, %s3463_s0 }
 0x51a   : > { %2762 = vmatprep.mubr.msk.f32.mxu0 %vm3063_vm4, %v3064_v54  ;;  %2844 = vmatpush3.bf16.msra.mxu0 %v2843_v58  ;;  %v2156_v55 = vld [vmem:[%s4058_s8] sm:$0xff]  ;;  %vm2070_vm14 = vcmp.gt.s32.totalorder %v2068_v61, 1  ;;  %vm2072_vm0 = vcmp.gt.s32.totalorder %v2068_v61, 3  ;;  %vm2071_vm1 = vcmp.gt.s32.totalorder %v2068_v61, 2  ;;  %s4061_s8 = sld [smem:[#allocation19_spill]] }
 0x51b   : > { %2845 = vmatprep.subr.bf16.mxu0 %v3062_v52  ;;  %v2849_v58 = vpack.c.bf16 %v2157_v56, %v2156_v55 }
 0x51c   : > { %2841 = vmatpush3.bf16.msra.mxu1 %v2840_v3  ;;  %v2152_v11 = vld [vmem:[%s4055_s10] sm:$0xff]  ;;  %v2153_v12 = vld [vmem:[%s4055_s10 + $0x8] sm:$0xff]  ;;  %v2154_v20 = vld [vmem:[%s4055_s10 + $0x10] sm:$0xff] }
 0x51d   : > { %2848 = vmatprep.subr.bf16.mxu1 %v3062_v52  ;;  %v2855_v24 = vpack.c.bf16 %v2153_v12, %v2152_v11  ;;  %v2155_v21 = vld [vmem:[%s4055_s10 + $0x18] sm:$0xff]  ;;  %s2331_s10 = scalar_select %p862_p4, 1, 0 }
 0x51e   : > { %2847 = vmatpush3.bf16.msra.mxu0 %v2846_v0  ;;  %v2858_v23 = vpack.c.bf16 %v2155_v21, %v2154_v20 }
 0x51f   : > { %2854 = vmatprep.subr.bf16.mxu0 %v3062_v52 }
 0x520   : > { %s1655_s9 = scalar_lea.vmem %s4061_s8, %s3463_s0  ;;  %s3074_s0 = smov 119  }
 0x5ec   : > { %v1560_v5 = vpop.f32.mrb[0].mxu0 }
 0x5ed   : > { %v1561_v7 = vadd.f32 %v2615_v4, %v1560_v5  ;;  %v2742_v8 = vpop.f32.mrb[1].mxu0 }
 0x5ef   : > { %v1565_v9 = vmin.f32 %v1561_v7, 0.0  ;;  %vm1564_vm10 = vcmp.gt.f32.partialorder %v1561_v7, 0.0 }
 0x5f1   : > { %v1566_v10 = vmul.f32 1.442695, %v1565_v9 }
 0x5f3   : > { %2967 = vpow2.f32 %v1566_v10 }
 0x5fd   : > { %v2968_v14 = vpop.eup %2967 }
 0x5fe   : > { %v2617_v17 = vadd.f32 -1.0, %v2968_v14 }
 0x600   : > { %v3530_v22 = vsel %vm1564_vm10, %v1561_v7, %v2617_v17 }
 0x601   : > { %2752 = vmatmul.mubr.msk.f32.vlgmr.msra.gmra.mrb[0].mxu1 %vm4031_vm8, %v3530_v22  ;;  %2763 = vmatmul.mubr.msk.f32.vlgmr.msra.gmra.mrb[2].mxu0 %vm4031_vm8, %v3530_v22  ;;  %2511 = vst.msk [vmem:[%s2510_s25] sm:$0xf] %vm4030_vm9, %v3530_v22  ;;  %s3068_s25 = smov 125  }
 0x602   : > { %2856 = vmatpush3.bf16.msra.mxu0 %v2855_v24  ;;  %2784 = vmatprep.mubr.msk.f32.mxu0 %vm3063_vm4, %v3064_v54 }
 0x603   : > { %2857 = vmatprep.subr.bf16.mxu0 %v3062_v52  ;;  %2773 = vmatprep.mubr.msk.f32.mxu1 %vm3063_vm4, %v3064_v54 }
 0x604   : > { %2850 = vmatpush3.bf16.msra.mxu1 %v2849_v58 }
 0x605   : > { %2851 = vmatprep.subr.bf16.mxu1 %v3062_v52 }
 0x606   : > { %2859 = vmatpush3.bf16.msra.mxu0 %v2858_v23 }
 0x607   : > { %2866 = vmatprep.subr.bf16.mxu0 %v3062_v52 }
 0x608   : > { %2853 = vmatpush3.bf16.msra.mxu1 %v2852_v60 }
 0x609   : > { %2785 = vmatmul.mubr.msk.f32.vlgmr.msra.gmra.mrb[4].mxu0 %vm4031_vm8, %v3530_v22  ;;  %2860 = vmatprep.subr.bf16.mxu1 %v3062_v52 }
 0x60a   : > { %2806 = vmatprep.mubr.msk.f32.mxu0 %vm3063_vm4, %v3064_v54 }
 0x6d4   : > { %v1651_v31 = vpop.f32.mrb[0].mxu1  ;;  %v2033_v33 = vpop.f32.mrb[2].mxu0 }
 0x6d5   : > { %v1652_v35 = vadd.f32 %v2618_v25, %v1651_v31  ;;  %v2034_v36 = vadd.f32 %v2622_v26, %v2033_v33  ;;  %v2753_v37 = vpop.f32.mrb[1].mxu1  ;;  %v2764_v38 = vpop.f32.mrb[3].mxu0 }
 0x6d7   : > { %v2047_v39 = vmul.f32 %v2041_v27, %v2034_v36  ;;  %v2043_v40 = vmul.f32 %v2037_v28, %v2034_v36  ;;  %2513 = vst.msk [vmem:[%s2512_s26] sm:$0xf] %vm4030_vm9, %v1652_v35  ;;  %v2048_v43 = vmul.f32 %v2042_v6, %v2034_v36  ;;  %v2044_v44 = vmul.f32 %v2038_v29, %v2034_v36  ;;  %s3066_s26 = smov 127  }
 0x6d8   : > { %v2046_v49 = vmul.f32 %v2040_v30, %v2034_v36  ;;  %v2045_v50 = vmul.f32 %v2039_v34, %v2034_v36 }
 0x6d9   : > { %v2062_v41 = vsel %vm4030_vm9, %v2047_v39, 0.0  ;;  %v2050_v42 = vsel %vm4030_vm9, %v2043_v40, 0.0  ;;  %v2065_v47 = vsel %vm4030_vm9, %v2048_v43, 0.0  ;;  %v2053_v48 = vsel %vm4030_vm9, %v2044_v44, 0.0 }
 0x6da   : > { %2063 = vadd.xlane.f32.xlu1 %v2062_v41  ;;  %2051 = vadd.xlane.f32.xlu0 %v2050_v42  ;;  %v2059_v51 = vsel %vm4030_vm9, %v2046_v49, 0.0  ;;  %v2056_v53 = vsel %vm4030_vm9, %v2045_v50, 0.0 }
 0x6dc   : > { %v3559_v45 = vpop.f32.mrb[4].mxu0 }
 0x6dd   : > { %v2786_v46 = vpop.f32.mrb[5].mxu0 }
 0x6de   : > { %2066 = vadd.xlane.f32.xlu1 %v2065_v47  ;;  %2054 = vadd.xlane.f32.xlu0 %v2053_v48 }
 0x6e2   : > { %2060 = vadd.xlane.f32.xlu1 %v2059_v51  ;;  %2057 = vadd.xlane.f32.xlu0 %v2056_v53 }
 0x767   : > { %v2064_v62 = vpop.xlane.xlu1 %2063  ;;  %v2052_v63 = vpop.xlane.xlu0 %2051 }
 0x768   : > { %v2079_v0 = vsel %vm2073_vm11, %v2064_v62, -1e+30  ;;  %v2075_v1 = vsel %vm2069_vm12, %v2052_v63, -1e+30 }
 0x769   : > { %v2086_v7 = vsel %vm2081_vm15, %v2079_v0, -inf  ;;  %v2082_v8 = vsel %vm2081_vm15, %v2075_v1, -inf }
 0x76a   : > { %v2087_v17 = vmax.f32 %v2082_v8, %v2086_v7 }
 0x76b   : > { %v2067_v2 = vpop.xlane.xlu1 %2066  ;;  %v2055_v3 = vpop.xlane.xlu0 %2054 }
 0x76c   : > { %v2080_v4 = vsel %vm2074_vm13, %v2067_v2, -1e+30  ;;  %v2076_v5 = vsel %vm2070_vm14, %v2055_v3, -1e+30 }
 0x76d   : > { %v2088_v9 = vsel %vm2081_vm15, %v2080_v4, -inf  ;;  %v2083_v10 = vsel %vm2081_vm15, %v2076_v5, -inf }
 0x76e   : > { %v2089_v11 = vmax.f32 %v2083_v10, %v2088_v9 }
 0x76f   : > { %v2061_v12 = vpop.xlane.xlu1 %2060  ;;  %v2058_v14 = vpop.xlane.xlu0 %2057 }
 0x770   : > { %v2078_v24 = vsel %vm2072_vm0, %v2061_v12, -1e+30  ;;  %v2077_v20 = vsel %vm2071_vm1, %v2058_v14, -1e+30  ;;  %v2090_v25 = vmax.f32 %v2087_v17, %v2089_v11 }
 0x771   : > { %v2085_v21 = vsel %vm2081_vm15, %v2078_v24, -inf  ;;  %v2084_v23 = vsel %vm2081_vm15, %v2077_v20, -inf }
 0x772   : > { %v2091_v26 = vmax.f32 %v2084_v23, %v2085_v21  ;;  %v2626_v21 = vld [vmem:[#allocation8] ss:$0 sm:$0xff] }
 0x774   : > { %v2092_v27 = vmax.f32 %v2090_v25, %v2091_v26 }
 0x776   : > { %v2093_v28 = vsub.f32 %v2075_v1, %v2092_v27  ;;  %v2094_v6 = vsub.f32 %v2076_v5, %v2092_v27  ;;  %v2095_v29 = vsub.f32 %v2077_v20, %v2092_v27  ;;  %v2096_v30 = vsub.f32 %v2078_v24, %v2092_v27 }
 0x777   : > { %v2097_v31 = vsub.f32 %v2079_v0, %v2092_v27  ;;  %v2098_v36 = vsub.f32 %v2080_v4, %v2092_v27 }
 0x778   : > { %v2099_v33 = vmul.f32 1.442695, %v2093_v28  ;;  %v2101_v34 = vmul.f32 1.442695, %v2094_v6  ;;  %v2103_v35 = vmul.f32 1.442695, %v2095_v29 }
 0x779   : > { %v2105_v37 = vmul.f32 1.442695, %v2096_v30  ;;  %v2107_v38 = vmul.f32 1.442695, %v2097_v31  ;;  %v2109_v39 = vmul.f32 1.442695, %v2098_v36 }
 0x77a   : > { %2969 = vpow2.f32 %v2099_v33  ;;  %v2336_v33 = vld [vmem:[%s4059_s12 + $0x8] sm:$0xff]  ;;  %v2338_v36 = vld [vmem:[%s4059_s12 + $0x18] sm:$0xff] }
 0x77b   : > { %2971 = vpow2.f32 %v2101_v34  ;;  %v3620_v34 = vld [vmem:[%s4004_s16] ss:$0 sm:$0xff] }
 0x77c   : > { %2973 = vpow2.f32 %v2103_v35  ;;  %v2337_v35 = vld [vmem:[%s4059_s12 + $0x10] sm:$0xff] }
 0x77d   : > { %2975 = vpow2.f32 %v2105_v37  ;;  %v2864_v37 = vpack.c.bf16 %v2338_v36, %v2337_v35 }
 0x77e   : > { %2977 = vpow2.f32 %v2107_v38  ;;  %v1468_v38 = vld [vmem:[%s1467_s29] sm:$0xf]  ;;  %s3072_s29 = smov 121  }
 0x77f   : > { %2979 = vpow2.f32 %v2109_v39  ;;  %v1656_v39 = vld [vmem:[%s1655_s9] sm:$0xf]  ;;  %s3075_s9 = smov 118  }
 0x784   : > { %v2970_v40 = vpop.eup %2969 }
 0x785   : > { %v2972_v41 = vpop.eup %2971  ;;  %v2111_v42 = vsel %vm2081_vm15, %v2970_v40, 0.0 }
 0x786   : > { %v2974_v43 = vpop.eup %2973  ;;  %v2112_v44 = vsel %vm2081_vm15, %v2972_v41, 0.0 }
 0x787   : > { %v2976_v46 = vpop.eup %2975  ;;  %v2113_v47 = vadd.f32 %v2112_v44, %v2111_v42  ;;  %v2114_v48 = vsel %vm2081_vm15, %v2974_v43, 0.0  ;;  %v1659_v42 = vld [vmem:[%s4061_s8 + $0x8] sm:$0xf]  ;;  %v1661_v44 = vld [vmem:[%s4061_s8 + $0x10] sm:$0xf] }
 0x788   : > { %v2978_v49 = vpop.eup %2977  ;;  %v2116_v51 = vsel %vm2081_vm15, %v2976_v46, 0.0 }
 0x789   : > { %v2115_v50 = vadd.f32 %v2114_v48, %v2113_v47  ;;  %v2980_v53 = vpop.eup %2979  ;;  %v2118_v56 = vsel %vm2081_vm15, %v2978_v49, 0.0 }
 0x78a   : > { %v2120_v58 = vsel %vm2081_vm15, %v2980_v53, 0.0 }
 0x78b   : > { %v2117_v55 = vadd.f32 %v2116_v51, %v2115_v50  ;;  %v1667_v51 = vsub.f32 %v1656_v39, %v1661_v44 }
 0x78d   : > { %v2119_v57 = vadd.f32 %v2118_v56, %v2117_v55 }
 0x78f   : > { %v2121_v59 = vadd.f32 %v2120_v58, %v2119_v57 }
 0x791   : > { %2981 = vrcp.f32 %v2121_v59  ;;  %v1673_v59 = vmul.f32 10.0, %v1667_v51 }
 0x79b   : > { %v2982_v60 = vpop.eup %2981 }
 0x79c   : > { %v2125_v61 = vmul.f32 %v2982_v60, %v2974_v43  ;;  %v2123_v62 = vmul.f32 %v2982_v60, %v2970_v40  ;;  %v2124_v63 = vmul.f32 %v2982_v60, %v2972_v41  ;;  %v2126_v0 = vmul.f32 %v2982_v60, %v2976_v46  ;;  %v1657_v40 = vld [vmem:[%s4061_s8] sm:$0xf]  ;;  %v1658_v41 = vld [vmem:[%s4061_s8 + $0x4] sm:$0xf]  ;;  %v1660_v43 = vld [vmem:[%s4061_s8 + $0xc] sm:$0xf] }
 0x79d   : > { %v2127_v2 = vmul.f32 %v2982_v60, %v2978_v49  ;;  %v2128_v5 = vmul.f32 %v2982_v60, %v2980_v53  ;;  %v1662_v46 = vld [vmem:[%s4061_s8 + $0x14] sm:$0xf]  ;;  %v1663_v47 = vsub.f32 %v1656_v39, %v1657_v40  ;;  %v1664_v48 = vsub.f32 %v1656_v39, %v1658_v41  ;;  %s2514_s8 = scalar_lea.vmem [#allocation4], %s3510_s2 }
 0x79e   : > { %v2137_v1 = vmul.f32 %v3512_v13, %v2125_v61  ;;  %v2135_v3 = vmul.f32 %v3514_v32, %v2123_v62  ;;  %v2136_v4 = vmul.f32 %v3516_v15, %v2124_v63  ;;  %v2138_v7 = vmul.f32 %v3518_v16, %v2126_v0 }
 0x79f   : > { %v2139_v12 = vmul.f32 %v3520_v18, %v2127_v2  ;;  %v2140_v13 = vmul.f32 %v3522_v19, %v2128_v5  ;;  %v3065_v18 = vmov 0   ;;  %v1665_v49 = vsub.f32 %v1656_v39, %v1659_v42 }
 0x7a0   : > { %v2141_v8 = vsel %vm4030_vm9, %v2135_v3, 0.0  ;;  %v2142_v9 = vsel %vm4030_vm9, %v2136_v4, 0.0  ;;  %v2144_v11 = vsel %vm4030_vm9, %v2137_v1, 0.0  ;;  %v2146_v17 = vsel %vm4030_vm9, %v2138_v7, 0.0  ;;  %2965 = vset.pattern.permute.xlu0 %v3065_v18  ;;  %2966 = vset.pattern.permute.xlu1 %v3065_v18 }
 0x7a1   : > { %v2143_v10 = vadd.f32 %v2142_v9, %v2141_v8  ;;  %v2148_v15 = vsel %vm4030_vm9, %v2139_v12, 0.0  ;;  %v2150_v16 = vsel %vm4030_vm9, %v2140_v13, 0.0  ;;  %v1666_v50 = vsub.f32 %v1656_v39, %v1660_v43 }
 0x7a2   : > { %v1668_v53 = vsub.f32 %v1656_v39, %v1662_v46  ;;  %v1669_v55 = vmul.f32 10.0, %v1663_v47  ;;  %v1670_v56 = vmul.f32 10.0, %v1664_v48  ;;  %v1671_v57 = vmul.f32 10.0, %v1665_v49 }
 0x7a3   : > { %v2145_v14 = vadd.f32 %v2144_v11, %v2143_v10  ;;  %v1672_v58 = vmul.f32 10.0, %v1666_v50  ;;  %v1680_v1 = vmul.f32 0.008333334, %v1673_v59  ;;  %v2332_v46 = vstv %s2331_s10 }
 0x7a4   : > { %v1674_v60 = vmul.f32 10.0, %v1668_v53  ;;  %v1676_v61 = vmul.f32 0.008333334, %v1669_v55  ;;  %v1677_v62 = vmul.f32 0.008333334, %v1670_v56  ;;  %vm3694_vm0 = vcmp.eq.s32.totalorder %v2332_v46, 1 }
 0x7a5   : > { %v2147_v32 = vadd.f32 %v2146_v17, %v2145_v14  ;;  %v1678_v63 = vmul.f32 0.008333334, %v1671_v57  ;;  %v1679_v0 = vmul.f32 0.008333334, %v1672_v58  ;;  %v1686_v8 = vfloor.f32 %v1680_v1 }
 0x7a6   : > { %v1681_v2 = vmul.f32 0.008333334, %v1674_v60  ;;  %v1682_v3 = vfloor.f32 %v1676_v61  ;;  %v1683_v4 = vfloor.f32 %v1677_v62 }
 0x7a7   : > { %v2149_v24 = vadd.f32 %v2148_v15, %v2147_v32  ;;  %v1684_v5 = vfloor.f32 %v1678_v63  ;;  %v1685_v7 = vfloor.f32 %v1679_v0  ;;  %v1692_v13 = vmax.f32 %v1686_v8, 0.0 }
 0x7a8   : > { %v1687_v9 = vfloor.f32 %v1681_v2  ;;  %v1688_v10 = vmax.f32 %v1682_v3, 0.0  ;;  %v1689_v11 = vmax.f32 %v1683_v4, 0.0 }
 0x7a9   : > { %v3604_v20 = vadd.f32 %v2150_v16, %v2149_v24  ;;  %v1690_v12 = vmax.f32 %v1684_v5, 0.0  ;;  %v1691_v14 = vmax.f32 %v1685_v7, 0.0  ;;  %v1698_v18 = vmin.f32 %v1692_v13, 10.0 }
 0x7aa   : > { %v1693_v17 = vmax.f32 %v1687_v9, 0.0  ;;  %v1694_v32 = vmin.f32 %v1688_v10, 10.0  ;;  %v1695_v15 = vmin.f32 %v1689_v11, 10.0 }
 0x7ab   : > { %2774 = vmatmul.mubr.msk.f32.vlgmr.msra.gmra.mrb[2].mxu1 %vm4031_vm8, %v3604_v20  ;;  %v1696_v24 = vmin.f32 %v1690_v12, 10.0  ;;  %v1697_v16 = vmin.f32 %v1691_v14, 10.0 }
 0x7ac   : > { %2795 = vmatprep.mubr.msk.f32.mxu1 %vm3063_vm4, %v3064_v54  ;;  %v2335_v54 = vld [vmem:[%s4059_s12] sm:$0xff] }
 0x87e   : > { %v2229_v19 = vpop.f32.mrb[2].mxu1 }
 0x87f   : > { %v2300_v23 = vadd.f32 %v3559_v45, %v2229_v19  ;;  %v2775_v25 = vpop.f32.mrb[3].mxu1  ;;  %v2861_v45 = vpack.c.bf16 %v2336_v33, %v2335_v54  ;;  %v1699_v19 = vmin.f32 %v1693_v17, 10.0 }
 0x880   : > { %v2876_v25 = vtrunc.f32 %v1696_v24 }
 0x881   : > { %v2310_v26 = vadd.f32 %v2626_v21, %v2300_v23  ;;  %2862 = vmatpush3.bf16.msra.mxu1 %v2861_v45  ;;  %v2872_v21 = vtrunc.f32 %v1694_v32  ;;  %v2874_v23 = vtrunc.f32 %v1695_v15  ;;  %v2620_v45 = vld [vmem:[#allocation10] ss:$0 sm:$0xff] }
 0x882   : > { %2863 = vmatprep.subr.bf16.mxu1 %v3062_v52 }
 0x883   : > { %v2311_v27 = vsub.f32 0.0, %v2310_v26  ;;  %v2878_v26 = vtrunc.f32 %v1697_v16 }
 0x885   : > { %v2312_v28 = vmul.f32 1.442695, %v2311_v27  ;;  %2865 = vmatpush3.bf16.msra.mxu1 %v2864_v37  ;;  %v2880_v27 = vtrunc.f32 %v1698_v18 }
 0x887   : > { %2983 = vpow2.f32 %v2312_v28  ;;  %v2882_v28 = vtrunc.f32 %v1699_v19  ;;  %v3669_v54 = vcvt.f32.s32 %v2880_v27 }
 0x889   : > { %v3671_v33 = vcvt.f32.s32 %v2882_v28  ;;  %vm1719_vm4 = vcmp.eq.s32.totalorder %v3669_v54, 0  ;;  %vm1743_vm14 = vcmp.eq.s32.totalorder %v3669_v54, 1  ;;  %vm1785_vm1 = vcmp.eq.s32.totalorder %v3669_v54, 3 }
 0x88a   : > { %v1731_v39 = vsel %vm1719_vm4, %v3620_v34, 0.0 }
 0x88b   : > { %vm1720_vm7 = vcmp.eq.s32.totalorder %v3671_v33, 0  ;;  %v1737_v48 = vadd.f32 %v2620_v45, %v1731_v39  ;;  %vm1744_vm15 = vcmp.eq.s32.totalorder %v3671_v33, 1  ;;  %vm1765_vm4 = vcmp.eq.s32.totalorder %v3671_v33, 2 }
 0x88c   : > { %v1732_v40 = vsel %vm1720_vm7, %v3620_v34, 0.0 }
 0x88d   : > { %v1738_v49 = vadd.f32 %v2620_v45, %v1732_v40 }
 0x891   : > { %v2984_v6 = vpop.eup %2983 }
 0x892   : > { %v2314_v29 = vadd.f32 1.0, %v2984_v6  ;;  %v3661_v6 = vcvt.f32.s32 %v2872_v21 }
 0x894   : > { %2985 = vrcp.f32 %v2314_v29  ;;  %v3663_v29 = vcvt.f32.s32 %v2874_v23  ;;  %vm1715_vm2 = vcmp.eq.s32.totalorder %v3661_v6, 0  ;;  %vm1739_vm10 = vcmp.eq.s32.totalorder %v3661_v6, 1 }
 0x895   : > { %v1727_v35 = vsel %vm1715_vm2, %v3620_v34, 0.0  ;;  %vm1781_vm7 = vcmp.eq.s32.totalorder %v3661_v6, 3 }
 0x896   : > { %vm1716_vm3 = vcmp.eq.s32.totalorder %v3663_v29, 0  ;;  %v1733_v41 = vadd.f32 %v2620_v45, %v1727_v35  ;;  %vm1740_vm11 = vcmp.eq.s32.totalorder %v3663_v29, 1  ;;  %vm1782_vm9 = vcmp.eq.s32.totalorder %v3663_v29, 3 }
 0x897   : > { %v1728_v36 = vsel %vm1716_vm3, %v3620_v34, 0.0  ;;  %vm4065_vm3 = vcmask 257024  }
 0x898   : > { %v1734_v42 = vadd.f32 %v2620_v45, %v1728_v36 }
 0x89e   : > { %v2986_v30 = vpop.eup %2985 }
 0x89f   : > { %2319 = vperm.xlu0 %2965, %v2986_v30   ;;  %v2323_v31 = vsub.f32 1.0, %v2986_v30  ;;  %v3665_v30 = vcvt.f32.s32 %v2876_v25 }
 0x8a1   : > { %2326 = vperm.xlu1 %2966, %v2323_v31   ;;  %v3667_v31 = vcvt.f32.s32 %v2878_v26  ;;  %vm1717_vm5 = vcmp.eq.s32.totalorder %v3665_v30, 0  ;;  %vm1741_vm12 = vcmp.eq.s32.totalorder %v3665_v30, 1  ;;  %vm1783_vm8 = vcmp.eq.s32.totalorder %v3665_v30, 3 }
 0x8a2   : > { %v1729_v37 = vsel %vm1717_vm5, %v3620_v34, 0.0 }
 0x8a3   : > { %vm1718_vm6 = vcmp.eq.s32.totalorder %v3667_v31, 0  ;;  %v1735_v43 = vadd.f32 %v2620_v45, %v1729_v37  ;;  %vm1742_vm13 = vcmp.eq.s32.totalorder %v3667_v31, 1  ;;  %vm1763_vm5 = vcmp.eq.s32.totalorder %v3667_v31, 2  ;;  %1871 = vrot.lane.b32.xlu0 %v3620_v34, %s3072_s29 }
 0x8a4   : > { %vm1784_vm2 = vcmp.eq.s32.totalorder %v3667_v31, 3 }
 0x8a5   : > { %1745 = vrot.lane.b32.xlu1 %v3620_v34, %s3066_s26  ;;  %s3073_s26 = smov 120  }
 0x8a7   : > { %1913 = vrot.lane.b32.xlu0 %v3620_v34, %s3074_s0 }
 0x8a9   : > { %1766 = vrot.lane.b32.xlu1 %v3620_v34, %s3067_s1  ;;  %s2516_s1 = scalar_lea.vmem [#allocation5], %s3510_s2 }
 0x8ad   : > { %1787 = vrot.lane.b32.xlu1 %v3620_v34, %s3068_s25 }
 0x8b1   : > { %1808 = vrot.lane.b32.xlu1 %v3620_v34, %s3069_s7 }
 0x8b5   : > { %1829 = vrot.lane.b32.xlu1 %v3620_v34, %s3070_s5 }
 0x8b9   : > { %1850 = vrot.lane.b32.xlu1 %v3620_v34, %s3071_s4 }
 0x8bd   : > { %1472 = vperm.xlu1 %2966, %v1468_v38   ;;  %v1730_v38 = vsel %vm1718_vm6, %v3620_v34, 0.0  ;;  %vm1764_vm6 = vcmp.eq.s32.totalorder %v3669_v54, 2 }
 0x8be   : > { %v1736_v44 = vadd.f32 %v2620_v45, %v1730_v38 }
 0x8c1   : > { %1892 = vrot.lane.b32.xlu1 %v3620_v34, %s3073_s26 }
 0x8c5   : > { %1934 = vrot.lane.b32.xlu1 %v3620_v34, %s3075_s9 }
 0x91e   : > { %v2320_v47 = vpop.permute.xlu0 %2319 }
 0x91f   : > { %v2322_v55 = vmul.f32 %v2320_v47, %v3530_v22 }
 0x920   : > { %v2327_v50 = vpop.permute.xlu1 %2326 }
 0x921   : > { %v2329_v51 = vmul.f32 %v2327_v50, %v3604_v20 }
 0x923   : > { %v2330_v20 = vadd.f32 %v2329_v51, %v2322_v55  ;;  %v1469_v55 = vlaneseq }
 0x924   : > { %v1746_v56 = vpop.permute.xlu1 %1745 }
 0x925   : > { %v1748_v57 = vsel %vm1739_vm10, %v1746_v56, 0.0  ;;  %v1749_v58 = vsel %vm1740_vm11, %v1746_v56, 0.0  ;;  %v1750_v59 = vsel %vm1741_vm12, %v1746_v56, 0.0  ;;  %v1751_v60 = vsel %vm1742_vm13, %v1746_v56, 0.0 }
 0x926   : > { %v1752_v61 = vsel %vm1743_vm14, %v1746_v56, 0.0  ;;  %v1753_v62 = vsel %vm1744_vm15, %v1746_v56, 0.0  ;;  %v1754_v63 = vadd.f32 %v1748_v57, %v1733_v41  ;;  %v1755_v0 = vadd.f32 %v1749_v58, %v1734_v42 }
 0x927   : > { %v1756_v1 = vadd.f32 %v1750_v59, %v1735_v43  ;;  %v1757_v2 = vadd.f32 %v1751_v60, %v1736_v44  ;;  %v1758_v3 = vadd.f32 %v1752_v61, %v1737_v48  ;;  %v1759_v4 = vadd.f32 %v1753_v62, %v1738_v49 }
 0x928   : > { %v2334_v5 = vsel %vm3694_vm0, %v2330_v20, %v3530_v22  ;;  %v1767_v7 = vpop.permute.xlu1 %1766  ;;  %vm1805_vm12 = vcmp.eq.s32.totalorder %v3667_v31, 4  ;;  %vm1806_vm13 = vcmp.eq.s32.totalorder %v3669_v54, 4  ;;  %vm1807_vm14 = vcmp.eq.s32.totalorder %v3671_v33, 4 }
 0x929   : > { %vm4064_vm15 = vcmask 261120   ;;  %2515 = vst.msk [vmem:[%s2514_s8] sm:$0xf] %vm4065_vm3, %v2334_v5  ;;  %vm4066_vm11 = vcmp.eq.s32.totalorder %v3661_v6, 2  ;;  %vm4067_vm10 = vcmp.eq.s32.totalorder %v3663_v29, 2  ;;  %vm4068_vm0 = vcmp.eq.s32.totalorder %v3665_v30, 2 }
 0x92a   : > { %2796 = vmatmul.mubr.msk.f32.vlgmr.msra.gmra.mrb[4].mxu1 %vm4064_vm15, %v2334_v5  ;;  %v1769_v8 = vsel %vm4066_vm11, %v1767_v7, 0.0  ;;  %v1770_v9 = vsel %vm4067_vm10, %v1767_v7, 0.0  ;;  %v1771_v22 = vsel %vm4068_vm0, %v1767_v7, 0.0  ;;  %v1772_v10 = vsel %vm1763_vm5, %v1767_v7, 0.0 }
 0x92b   : > { %v1773_v11 = vsel %vm1764_vm6, %v1767_v7, 0.0  ;;  %v1774_v12 = vsel %vm1765_vm4, %v1767_v7, 0.0  ;;  %v1775_v14 = vadd.f32 %v1769_v8, %v1754_v63  ;;  %v1776_v13 = vadd.f32 %v1770_v9, %v1755_v0 }
 0x92c   : > { %vm1823_vm3 = vcmp.eq.s32.totalorder %v3661_v6, 5  ;;  %v1777_v17 = vadd.f32 %v1771_v22, %v1756_v1  ;;  %v1778_v32 = vadd.f32 %v1772_v10, %v1757_v2  ;;  %v1779_v15 = vadd.f32 %v1773_v11, %v1758_v3  ;;  %v1788_v16 = vpop.permute.xlu1 %1787 }
 0x92d   : > { %v1780_v24 = vadd.f32 %v1774_v12, %v1759_v4  ;;  %vm1824_vm10 = vcmp.eq.s32.totalorder %v3663_v29, 5  ;;  %vm1825_vm11 = vcmp.eq.s32.totalorder %v3665_v30, 5  ;;  %vm1826_vm5 = vcmp.eq.s32.totalorder %v3667_v31, 5 }
 0x92e   : > { %vm1827_vm6 = vcmp.eq.s32.totalorder %v3669_v54, 5  ;;  %v1790_v18 = vsel %vm1781_vm7, %v1788_v16, 0.0  ;;  %v1791_v19 = vsel %vm1782_vm9, %v1788_v16, 0.0  ;;  %v1792_v21 = vsel %vm1783_vm8, %v1788_v16, 0.0 }
 0x92f   : > { %v1793_v23 = vsel %vm1784_vm2, %v1788_v16, 0.0  ;;  %v1794_v25 = vsel %vm1785_vm1, %v1788_v16, 0.0  ;;  %vm4069_vm4 = vcmp.eq.s32.totalorder %v3671_v33, 3  ;;  %v1796_v27 = vadd.f32 %v1790_v18, %v1775_v14  ;;  %v2425_v18 = vld [vmem:[%s4003_s14] sm:$0xff] }
 0x930   : > { %v1795_v26 = vsel %vm4069_vm4, %v1788_v16, 0.0  ;;  %v1797_v28 = vadd.f32 %v1791_v19, %v1776_v13  ;;  %v1798_v45 = vadd.f32 %v1792_v21, %v1777_v17  ;;  %v1799_v35 = vadd.f32 %v1793_v23, %v1778_v32  ;;  %v1809_v38 = vpop.permute.xlu1 %1808  ;;  %v2426_v19 = vld [vmem:[%s4003_s14 + $0x8] sm:$0xff]  ;;  %v2427_v23 = vld [vmem:[%s4003_s14 + $0x10] sm:$0xff] }
 0x931   : > { %v1800_v36 = vadd.f32 %v1794_v25, %v1779_v15  ;;  %v1801_v37 = vadd.f32 %v1795_v26, %v1780_v24  ;;  %vm1828_vm9 = vcmp.eq.s32.totalorder %v3671_v33, 5  ;;  %vm1844_vm8 = vcmp.eq.s32.totalorder %v3661_v6, 6  ;;  %v1475_v15 = vld [vmem:[#allocation7] sm:$0xf] }
 0x932   : > { %vm1845_vm7 = vcmp.eq.s32.totalorder %v3663_v29, 6  ;;  %vm1846_vm2 = vcmp.eq.s32.totalorder %v3665_v30, 6  ;;  %vm4070_vm1 = vcmp.eq.s32.totalorder %v3661_v6, 4  ;;  %vm4071_vm15 = vcmp.eq.s32.totalorder %v3663_v29, 4  ;;  %v2428_v25 = vld [vmem:[%s4003_s14 + $0x18] sm:$0xff] }
 0x933   : > { %v1811_v39 = vsel %vm4070_vm1, %v1809_v38, 0.0  ;;  %v1812_v40 = vsel %vm4071_vm15, %v1809_v38, 0.0  ;;  %vm4072_vm0 = vcmp.eq.s32.totalorder %v3665_v30, 4  ;;  %v1814_v42 = vsel %vm1805_vm12, %v1809_v38, 0.0 }
 0x934   : > { %v1813_v41 = vsel %vm4072_vm0, %v1809_v38, 0.0  ;;  %v1815_v43 = vsel %vm1806_vm13, %v1809_v38, 0.0  ;;  %v1816_v44 = vsel %vm1807_vm14, %v1809_v38, 0.0  ;;  %v1817_v46 = vadd.f32 %v1811_v39, %v1796_v27  ;;  %v1830_v53 = vpop.permute.xlu1 %1829 }
 0x935   : > { %v1818_v47 = vadd.f32 %v1812_v40, %v1797_v28  ;;  %v1819_v48 = vadd.f32 %v1813_v41, %v1798_v45  ;;  %v1820_v49 = vadd.f32 %v1814_v42, %v1799_v35  ;;  %v1821_v50 = vadd.f32 %v1815_v43, %v1800_v36  ;;  %v1872_v36 = vpop.permute.xlu0 %1871 }
 0x936   : > { %v1822_v51 = vadd.f32 %v1816_v44, %v1801_v37  ;;  %vm1847_vm4 = vcmp.eq.s32.totalorder %v3667_v31, 6  ;;  %vm1848_vm1 = vcmp.eq.s32.totalorder %v3669_v54, 6  ;;  %vm1849_vm15 = vcmp.eq.s32.totalorder %v3671_v33, 6 }
 0x937   : > { %v1832_v20 = vsel %vm1823_vm3, %v1830_v53, 0.0  ;;  %v1833_v56 = vsel %vm1824_vm10, %v1830_v53, 0.0  ;;  %v1834_v57 = vsel %vm1825_vm11, %v1830_v53, 0.0  ;;  %v1835_v58 = vsel %vm1826_vm5, %v1830_v53, 0.0 }
 0x938   : > { %v1836_v59 = vsel %vm1827_vm6, %v1830_v53, 0.0  ;;  %v1837_v60 = vsel %vm1828_vm9, %v1830_v53, 0.0  ;;  %v1838_v61 = vadd.f32 %v1832_v20, %v1817_v46  ;;  %v1839_v62 = vadd.f32 %v1833_v56, %v1818_v47  ;;  %v1851_v3 = vpop.permute.xlu1 %1850 }
 0x939   : > { %v1840_v63 = vadd.f32 %v1834_v57, %v1819_v48  ;;  %v1841_v0 = vadd.f32 %v1835_v58, %v1820_v49  ;;  %v1842_v1 = vadd.f32 %v1836_v59, %v1821_v50  ;;  %v1843_v2 = vadd.f32 %v1837_v60, %v1822_v51  ;;  %v1914_v56 = vpop.permute.xlu0 %1913 }
 0x93a   : > { %v1470_v4 = vand.u32 127, %v1469_v55  ;;  %v1853_v5 = vsel %vm1844_vm8, %v1851_v3, 0.0  ;;  %v1854_v7 = vsel %vm1845_vm7, %v1851_v3, 0.0  ;;  %v1855_v8 = vsel %vm1846_vm2, %v1851_v3, 0.0 }
 0x93b   : > { %v1856_v9 = vsel %vm1847_vm4, %v1851_v3, 0.0  ;;  %v1857_v22 = vsel %vm1848_vm1, %v1851_v3, 0.0  ;;  %v1858_v10 = vsel %vm1849_vm15, %v1851_v3, 0.0  ;;  %v3807_v11 = vadd.f32 %v1853_v5, %v1838_v61 }
 0x93c   : > { %v3809_v12 = vadd.f32 %v1854_v7, %v1839_v62  ;;  %v3811_v14 = vadd.f32 %v1855_v8, %v1840_v63  ;;  %v3813_v13 = vadd.f32 %v1856_v9, %v1841_v0  ;;  %v3815_v17 = vadd.f32 %v1857_v22, %v1842_v1  ;;  %v1473_v24 = vpop.permute.xlu1 %1472 }
 0x93d   : > { %v3817_v32 = vadd.f32 %v1858_v10, %v1843_v2  ;;  %vm1477_vm12 = vcmask 101376   ;;  %vm1474_vm13 = vcmp.eq.s32.totalorder %v1470_v4, %v1473_v24  ;;  %v2867_v21 = vpack.c.bf16 %v2426_v19, %v2425_v18 }
 0x93e   : > { %v1476_v16 = vsel %vm1474_vm13, -1e+30, %v1475_v15  ;;  %v2870_v26 = vpack.c.bf16 %v2428_v25, %v2427_v23  ;;  %vm1865_vm14 = vcmp.eq.s32.totalorder %v3661_v6, 7  ;;  %vm1866_vm3 = vcmp.eq.s32.totalorder %v3663_v29, 7 }
 0x93f   : > { %1478 = vst.msk [vmem:[#allocation7] sm:$0xf] %vm1477_vm12, %v1476_v16  ;;  %2868 = vmatpush3.bf16.msra.mxu0 %v2867_v21  ;;  %vm1867_vm10 = vcmp.eq.s32.totalorder %v3665_v30, 7  ;;  %vm1868_vm11 = vcmp.eq.s32.totalorder %v3667_v31, 7  ;;  %vm1869_vm5 = vcmp.eq.s32.totalorder %v3669_v54, 7  ;;  %vm1870_vm6 = vcmp.eq.s32.totalorder %v3671_v33, 7 }
 0x940   : > { %2869 = vmatprep.subr.bf16.mxu0 %v3062_v52  ;;  %v2627_v52 = vld [vmem:[%s4002_s13] ss:$0 sm:$0xff]  ;;  %vm1890_vm0 = vcmp.eq.s32.totalorder %v3669_v54, 8  ;;  %vm1910_vm13 = vcmp.eq.s32.totalorder %v3667_v31, 9  ;;  %vm1911_vm9 = vcmp.eq.s32.totalorder %v3669_v54, 9  ;;  %vm1912_vm7 = vcmp.eq.s32.totalorder %v3671_v33, 9  ;;  %v1893_v41 = vpop.permute.xlu1 %1892 }
 0x941   : > { %vm1928_vm2 = vcmp.eq.s32.totalorder %v3661_v6, 10  ;;  %vm1929_vm8 = vcmp.eq.s32.totalorder %v3663_v29, 10  ;;  %vm1930_vm4 = vcmp.eq.s32.totalorder %v3665_v30, 10  ;;  %vm1931_vm1 = vcmp.eq.s32.totalorder %v3667_v31, 10 }
 0x942   : > { %vm1932_vm15 = vcmp.eq.s32.totalorder %v3669_v54, 10  ;;  %vm1933_vm12 = vcmp.eq.s32.totalorder %v3671_v33, 10  ;;  %v1874_v37 = vsel %vm1865_vm14, %v1872_v36, 0.0  ;;  %v1875_v38 = vsel %vm1866_vm3, %v1872_v36, 0.0  ;;  %v2630_v54 = vld [vmem:[#allocation9] ss:$0 sm:$0xff] }
 0x943   : > { %2871 = vmatpush3.bf16.msra.mxu0 %v2870_v26  ;;  %v1876_v39 = vsel %vm1867_vm10, %v1872_v36, 0.0  ;;  %v1877_v40 = vsel %vm1868_vm11, %v1872_v36, 0.0  ;;  %v1878_v42 = vsel %vm1869_vm5, %v1872_v36, 0.0  ;;  %v1879_v43 = vsel %vm1870_vm6, %v1872_v36, 0.0 }
 0x944   : > { %v1880_v44 = vadd.f32 %v1874_v37, %v3807_v11  ;;  %v1881_v46 = vadd.f32 %v1875_v38, %v3809_v12  ;;  %v1882_v47 = vadd.f32 %v1876_v39, %v3811_v14  ;;  %v1883_v48 = vadd.f32 %v1877_v40, %v3813_v13  ;;  %v1935_v5 = vpop.permute.xlu1 %1934 }
 0x945   : > { %v1884_v49 = vadd.f32 %v1878_v42, %v3815_v17  ;;  %v1885_v50 = vadd.f32 %v1879_v43, %v3817_v32  ;;  %vm4073_vm10 = vcmp.eq.s32.totalorder %v3661_v6, 8  ;;  %vm4074_vm11 = vcmp.eq.s32.totalorder %v3663_v29, 8 }
 0x946   : > { %v1895_v51 = vsel %vm4073_vm10, %v1893_v41, 0.0  ;;  %v1896_v53 = vsel %vm4074_vm11, %v1893_v41, 0.0  ;;  %vm4075_vm5 = vcmp.eq.s32.totalorder %v3665_v30, 8  ;;  %vm4076_vm6 = vcmp.eq.s32.totalorder %v3667_v31, 8 }
 0x947   : > { %v1897_v55 = vsel %vm4075_vm5, %v1893_v41, 0.0  ;;  %v1898_v20 = vsel %vm4076_vm6, %v1893_v41, 0.0  ;;  %v1899_v57 = vsel %vm1890_vm0, %v1893_v41, 0.0  ;;  %vm4077_vm14 = vcmp.eq.s32.totalorder %v3671_v33, 8 }
 0x948   : > { %v1900_v58 = vsel %vm4077_vm14, %v1893_v41, 0.0  ;;  %v1901_v59 = vadd.f32 %v1895_v51, %v1880_v44  ;;  %v1902_v60 = vadd.f32 %v1896_v53, %v1881_v46  ;;  %v1903_v61 = vadd.f32 %v1897_v55, %v1882_v47 }
 0x949   : > { %v1904_v62 = vadd.f32 %v1898_v20, %v1883_v48  ;;  %v1905_v63 = vadd.f32 %v1899_v57, %v1884_v49  ;;  %v1906_v0 = vadd.f32 %v1900_v58, %v1885_v50  ;;  %vm4078_vm10 = vcmp.eq.s32.totalorder %v3661_v6, 9 }
 0x94a   : > { %v1916_v1 = vsel %vm4078_vm10, %v1914_v56, 0.0  ;;  %vm4079_vm11 = vcmp.eq.s32.totalorder %v3663_v29, 9  ;;  %vm4080_vm5 = vcmp.eq.s32.totalorder %v3665_v30, 9  ;;  %v1919_v4 = vsel %vm1910_vm13, %v1914_v56, 0.0 }
 0x94b   : > { %v1917_v2 = vsel %vm4079_vm11, %v1914_v56, 0.0  ;;  %v1918_v3 = vsel %vm4080_vm5, %v1914_v56, 0.0  ;;  %v1920_v7 = vsel %vm1911_vm9, %v1914_v56, 0.0  ;;  %v1921_v8 = vsel %vm1912_vm7, %v1914_v56, 0.0 }
 0x94c   : > { %v1922_v9 = vadd.f32 %v1916_v1, %v1901_v59  ;;  %v1923_v22 = vadd.f32 %v1917_v2, %v1902_v60  ;;  %v1924_v11 = vadd.f32 %v1918_v3, %v1903_v61  ;;  %v1925_v12 = vadd.f32 %v1919_v4, %v1904_v62 }
 0x94d   : > { %v1926_v14 = vadd.f32 %v1920_v7, %v1905_v63  ;;  %v1927_v13 = vadd.f32 %v1921_v8, %v1906_v0  ;;  %v1937_v32 = vsel %vm1928_vm2, %v1935_v5, 0.0  ;;  %v1938_v15 = vsel %vm1929_vm8, %v1935_v5, 0.0 }
 0x94e   : > { %v1939_v24 = vsel %vm1930_vm4, %v1935_v5, 0.0  ;;  %v1940_v16 = vsel %vm1931_vm1, %v1935_v5, 0.0  ;;  %v1941_v18 = vsel %vm1932_vm15, %v1935_v5, 0.0  ;;  %v1942_v19 = vsel %vm1933_vm12, %v1935_v5, 0.0 }
 0x94f   : > { %v1943_v21 = vadd.f32 %v1937_v32, %v1922_v9  ;;  %v1944_v23 = vadd.f32 %v1938_v15, %v1923_v22  ;;  %v1945_v29 = vadd.f32 %v1939_v24, %v1924_v11  ;;  %v1946_v25 = vadd.f32 %v1940_v16, %v1925_v12 }
 0x950   : > { %vm4081_vm9 = vcmask 261120   ;;  %v1947_v30 = vadd.f32 %v1941_v18, %v1926_v14  ;;  %v1948_v31 = vadd.f32 %v1942_v19, %v1927_v13  ;;  %vm4082_vm8 = vcmask 3072  }
 0x951   : > { %1950 = vst.msk [vmem:[#allocation6] sm:$0xf] %vm4082_vm8, %v1943_v21  ;;  %vm4083_vm7 = vmmov %vm4082_vm8 }
 0x952   : > { %1951 = vst.msk [vmem:[#allocation6 + $0x4] sm:$0xf] %vm4083_vm7, %v1944_v23  ;;  %vm4084_vm2 = vmmov %vm4083_vm7 }
 0x953   : > { %1952 = vst.msk [vmem:[#allocation6 + $0x8] sm:$0xf] %vm4084_vm2, %v1945_v29  ;;  %vm4085_vm0 = vmmov %vm4084_vm2 }
 0x954   : > { %1953 = vst.msk [vmem:[#allocation6 + $0xc] sm:$0xf] %vm4085_vm0, %v1946_v25  ;;  %vm4086_vm4 = vmmov %vm4085_vm0 }
 0x955   : > { %1954 = vst.msk [vmem:[#allocation6 + $0x10] sm:$0xf] %vm4086_vm4, %v1947_v30  ;;  %vm4087_vm1 = vmmov %vm4085_vm0 }
 0x956   : > { %1955 = vst.msk [vmem:[#allocation6 + $0x14] sm:$0xf] %vm4087_vm1, %v1948_v31  ;;  %vm4088_vm15 = vmmov %vm4085_vm0 }
 0x9fd   : > { %v2415_v27 = vpop.f32.mrb[4].mxu1 }
 0x9fe   : > { %v3839_v28 = vadd.f32 %v2627_v52, %v2415_v27  ;;  %v2797_v45 = vpop.f32.mrb[5].mxu1 }
 0xa00   : > { %v2420_v35 = vmin.f32 %v3839_v28, 0.0  ;;  %vm2419_vm3 = vcmp.gt.f32.partialorder %v3839_v28, 0.0 }
 0xa02   : > { %v2421_v34 = vmul.f32 1.442695, %v2420_v35 }
 0xa04   : > { %2987 = vpow2.f32 %v2421_v34 }
 0xa0e   : > { %v2988_v10 = vpop.eup %2987 }
 0xa0f   : > { %v2629_v17 = vadd.f32 -1.0, %v2988_v10 }
 0xa11   : > { %v2424_v6 = vsel %vm2419_vm3, %v3839_v28, %v2629_v17 }
 0xa12   : > { %2807 = vmatmul.mubr.msk.f32.vlgmr.msra.gmra.mrb[6].mxu0 %vm4081_vm9, %v2424_v6 }
 0xae5   : > { %v2505_v33 = vpop.f32.mrb[6].mxu0 }
 0xae6   : > { %v2506_v26 = vadd.f32 %v2630_v54, %v2505_v33  ;;  %v2808_v52 = vpop.f32.mrb[7].mxu0 }
 0xae8   : > { %2517 = vst.msk [vmem:[%s2516_s1] sm:$0xf] %vm4088_vm15, %v2506_v26 }
 0xae9 PF: > { %p2892_p11 = scmp.eq.s32.totalorder %s3244_s17, 6  ;;  %s3076_s25 = smov [#allocation13]  }
 0xaea   : > { %s2525_s7 = sshll.u32 %s3076_s25, 4  ;;  %s3077_s5 = smov [#allocation15]   ;;  %s2526_s7 = int_to_ptr.vmem [resolvable:$true] %s2525_s7 }
 0xaeb   : > { %s2536_s3 = sshll.u32 %s3077_s5, 4  ;;  %s2989_s6 = scalar_lea.vmem %s2526_s7, 16  ;;  %s3934_s3 = int_to_ptr.vmem [resolvable:$true] %s2536_s3 }
 0xaec   : > { %p2990_p12 = scmp.ne.s32.totalorder %s2526_s7, %s2989_s6  ;;  %s2995_s4 = scalar_lea.vmem %s2526_s7, 32 }
 0xaed   : > { %p2996_p1 = scmp.lt.s32.totalorder %s2526_s7, %s2526_s7  ;;  %p2997_p2 = scmp.lt.s32.totalorder %s2995_s4, %s2989_s6 }
 0xaee   : > { %p2991_p13 = pnand %p2990_p12, %p2892_p11 }
 0xaef   : > { %p2998_p3 = por %p2997_p2, %p2996_p1 }
 0xaf0   : > { %p2992_p0 = pneg %p2991_p13 }
 0xaf2   : > { %p2999_p4 = pnand %p2998_p3, %p2992_p0 }
 0xaf4   : > { %3002 = shalt.err (!%p2999_p4)
}
 0xaf5   : > { %s3003_s29 = scalar_lea.hbm %s4012_s27, 16 }
 0xaf6   : > { %p3004_p5 = scmp.ne.s32.totalorder %s4012_s27, %s3003_s29  ;;  %p3009_p8 = scmp.lt.u32.totalorder %s3003_s29, %s4012_s27 }
 0xaf8   : > { %p3005_p6 = pnand %p3004_p5, %p2892_p11 }
 0xafa   : > { %p3006_p7 = pneg %p3005_p6 }
 0xafc   : > { %p3011_p9 = pnand %p3009_p8, %p3006_p7 }
 0xafe   : > { %3014 = shalt.err (!%p3011_p9)
}
 0xaff   : > { %2885 = dma.vmem_to_hbm [thread:$0]  (%p2892_p11), %s2526_s7, 16, %s4012_s27, [#allocation14]  }
 0xb00   : > { %s3015_s25 = scalar_lea.vmem %s3934_s3, 16  ;;  %s3021_s5 = scalar_lea.vmem %s3934_s3, 32 }
 0xb01   : > { %p3016_p10 = scmp.ne.s32.totalorder %s3934_s3, %s3015_s25  ;;  %p3022_p0 = scmp.lt.s32.totalorder %s3934_s3, %s3934_s3 }
 0xb02   : > { %p3023_p1 = scmp.lt.s32.totalorder %s3021_s5, %s3015_s25 }
 0xb03   : > { %p3017_p12 = pnand %p3016_p10, %p2892_p11 }
 0xb04   : > { %p3024_p2 = por %p3023_p1, %p3022_p0 }
 0xb05   : > { %p3018_p13 = pneg %p3017_p12 }
 0xb07   : > { %p3025_p3 = pnand %p3024_p2, %p3018_p13 }
 0xb09   : > { %3028 = shalt.err (!%p3025_p3)
}
 0xb0a   : > { %s3029_s2 = scalar_lea.hbm %s4013_s28, 16 }
 0xb0b   : > { %p3030_p4 = scmp.ne.s32.totalorder %s4013_s28, %s3029_s2  ;;  %p3035_p7 = scmp.lt.u32.totalorder %s3029_s2, %s4013_s28 }
 0xb0d   : > { %p3031_p5 = pnand %p3030_p4, %p2892_p11 }
 0xb0f   : > { %p3032_p6 = pneg %p3031_p5 }
 0xb11   : > { %p3037_p8 = pnand %p3035_p7, %p3032_p6 }
 0xb13   : > { %3040 = shalt.err (!%p3037_p8)
}
 0xb14   : > { %2887 = dma.vmem_to_hbm [thread:$0]  (%p2892_p11), %s3934_s3, 16, %s4013_s28, [#allocation16]  }
 0xb15   : > { %3046 = dma.done.wait (%p2892_p11), [#allocation14], 16  }
 0xb16   : > { %3048 = vsyncadd (%p2892_p11), [#allocation14], 4294967280 }
 0xb17   : > { %3050 = dma.done.wait (%p2892_p11), [#allocation16], 16  }
 0xb18   : > { %3052 = vsyncadd (%p2892_p11), [#allocation16], 4294967280 }
 0xb19 PF: > { %s51_s15 = sadd.s32 1, %s3055_s15  }
 0xb1a   : > { %p48_p9 = scmp.ge.s32.totalorder %s51_s15, 9  }
 0xb1c   :  { %50 = sbr.rel (!%p48_p9) target bundleno = 23 (0x17), region = 182 }
 0xb23   :  { %2553 = vsyncpa [#allocation14], 1 }
 0xb24   :  { %2555 = vsyncpa [#allocation14 + $0x1], 1 }
 0xb25   :  { %2556 = vsyncpa [#allocation16], 1 }

</bundles_post_ra>
